<compile_context>
chip_gen: v7x
topology: tpu7x:2x2x1
jax: 0.10.0
libtpu: 0.0.40
codegen_flags: <defaults>
</compile_context>

<pallas_src>
import math
import functools

import jax
import jax.numpy as jnp
from jax.experimental import pallas as pl
from jax.experimental.pallas import tpu as pltpu

LN_EPS = 1e-5            # PyTorch nn.LayerNorm default
MASK_NEG = -1e30         # additive causal bias (kept in f32 everywhere)


def _vmem_limit_bytes():
    """Scoped-VMEM limit derived from the part (v7x: 64 MiB, v5e/v6e: 128 MiB)."""
    mib = 1024 * 1024
    try:
        cap = int(pltpu.get_tpu_info().vmem_capacity_bytes)
    except Exception:            # not queryable -> conservative (v7x-safe) default
        cap = 64 * mib
    # leave ~20 MiB headroom for internal scratch; never exceed 75% of the part
    return max(32 * mib, min(int(cap * 0.75), cap - 20 * mib))


VMEM_LIMIT = _vmem_limit_bytes()


# ----------------------------- in-kernel helpers -----------------------------
def _layernorm(x, w, b):
    mu = jnp.mean(x, axis=-1, keepdims=True)
    xc = x - mu
    var = jnp.mean(xc * xc, axis=-1, keepdims=True)
    return xc * jax.lax.rsqrt(var + LN_EPS) * w + b


def _gelu_exact(x):
    # nn.GELU() default = exact erf formulation
    return 0.5 * x * (1.0 + jax.lax.erf(x * (1.0 / math.sqrt(2.0))))


# ------------------------- fused transformer stack ---------------------------
def gpt2_stack_kernel(x_ref,
                      ln1_w_ref, ln1_b_ref,
                      wqkv_ref, bqkv_ref, wo_ref, bo_ref,
                      ln2_w_ref, ln2_b_ref,
                      w1_ref, b1_ref, w2_ref, b2_ref,
                      lnf_w_ref, lnf_b_ref,
                      o_ref, res_ref, *, n_head, seq_t, b_tile):
    """One grid step == one transformer layer applied to a (b_tile*seq_t, E) slab.

    Grid = (batch_tiles, n_layer); the layer axis is "arbitrary" and the
    residual stream stays resident in the f32 VMEM scratch `res_ref`.
    """
    layer = pl.program_id(1)
    last_layer = pl.num_programs(1) - 1

    M, E = x_ref.shape                      # M = b_tile * seq_t
    T, BT, H = seq_t, b_tile, n_head
    dh = E // H
    scale = 1.0 / math.sqrt(dh)

    # Load the embeddings into the resident residual accumulator once.
    @pl.when(layer == 0)
    def _():
        res_ref[...] = x_ref[...].astype(jnp.float32)

    x = res_ref[...]                        # (M, E) residual stream in f32

    # Causal additive bias built in-kernel (VPU iota + compare; no HBM traffic).
    rows = jax.lax.broadcasted_iota(jnp.int32, (T, T), 0)
    cols = jax.lax.broadcasted_iota(jnp.int32, (T, T), 1)
    mask = jnp.where(rows >= cols, jnp.float32(0.0), jnp.float32(MASK_NEG))

    # ---- attention sub-layer ----
    xn = _layernorm(x, ln1_w_ref[...], ln1_b_ref[...])
    # weights are pre-transposed to (in, out), stored bf16; accumulate in f32
    qkv = jnp.dot(xn.astype(jnp.bfloat16), wqkv_ref[...],
                  preferred_element_type=jnp.float32) + bqkv_ref[...]
    qkv = qkv.astype(jnp.bfloat16)          # relayouts below move bf16, not f32

    def heads(m):                           # (M, E) -> (BT*H, T, dh) leading-batch
        return (m.reshape(BT, T, H, dh)
                  .transpose(0, 2, 1, 3)
                  .reshape(BT * H, T, dh))

    q = heads(qkv[:, 0:E])                  # lane-aligned slices at E granularity
    k = heads(qkv[:, E:2 * E])
    v = heads(qkv[:, 2 * E:3 * E])

    # batched MXU matmuls over the fused (batch*head) axis; f32 scores/stats
    s = jnp.einsum('bqd,bkd->bqk', q, k, preferred_element_type=jnp.float32)
    s = s * scale + mask[None, :, :]
    s = s - jnp.max(s, axis=-1, keepdims=True)
    p = jnp.exp(s)
    # approx reciprocal uses the EUP slot; exact parity would use a true divide
    p = p * pl.reciprocal(jnp.sum(p, axis=-1, keepdims=True), approx=True)
    ctx = jnp.einsum('bqk,bkd->bqd', p.astype(jnp.bfloat16), v,
                     preferred_element_type=jnp.float32)
    ctx = (ctx.reshape(BT, H, T, dh)
              .transpose(0, 2, 1, 3)
              .reshape(M, E))
    attn = jnp.dot(ctx.astype(jnp.bfloat16), wo_ref[...],
                   preferred_element_type=jnp.float32) + bo_ref[...]
    x = x + attn                            # residual (dropout = identity)

    # ---- MLP sub-layer ----
    xn = _layernorm(x, ln2_w_ref[...], ln2_b_ref[...])
    h = _gelu_exact(jnp.dot(xn.astype(jnp.bfloat16), w1_ref[...],
                            preferred_element_type=jnp.float32) + b1_ref[...])
    h = jnp.dot(h.astype(jnp.bfloat16), w2_ref[...],
                preferred_element_type=jnp.float32) + b2_ref[...]
    x = x + h                               # residual (dropout = identity)

    res_ref[...] = x                        # carry residual to the next layer

    # ---- epilogue: final LayerNorm folded in, bf16 out for the LM head ----
    @pl.when(layer == last_layer)
    def _():
        o_ref[...] = _layernorm(x, lnf_w_ref[...], lnf_b_ref[...]).astype(o_ref.dtype)


def gpt2_blocks_fused(x, params, *, n_head, seq_t, b_tile):
    """x: (B*T, E) f32 embeddings -> (B*T, E) bf16 ln_f-normalized activations."""
    M, E = x.shape
    batch = M // seq_t
    assert batch % b_tile == 0
    nb = batch // b_tile
    n_layer = params["wqkv_t"].shape[0]
    tile_rows = b_tile * seq_t

    def layer_spec(arr):
        # one layer slab per grid step along the (inner, "arbitrary") layer axis;
        # default double-buffering overlaps layer l+1 weight DMA with layer l compute
        return pl.BlockSpec((None,) + arr.shape[1:], lambda bt, l: (l, 0, 0))

    in_specs = [
        pl.BlockSpec((tile_rows, E), lambda bt, l: (bt, 0)),       # x (const over l)
        layer_spec(params["ln1_w"]), layer_spec(params["ln1_b"]),
        layer_spec(params["wqkv_t"]), layer_spec(params["bqkv"]),
        layer_spec(params["wo_t"]), layer_spec(params["bo"]),
        layer_spec(params["ln2_w"]), layer_spec(params["ln2_b"]),
        layer_spec(params["w1_t"]), layer_spec(params["b1"]),
        layer_spec(params["w2_t"]), layer_spec(params["b2"]),
        pl.BlockSpec((1, E), lambda bt, l: (0, 0)),                # ln_f w
        pl.BlockSpec((1, E), lambda bt, l: (0, 0)),                # ln_f b
    ]
    out_spec = pl.BlockSpec((tile_rows, E), lambda bt, l: (bt, 0))

    kernel = functools.partial(gpt2_stack_kernel, n_head=n_head,
                               seq_t=seq_t, b_tile=b_tile)
    return pl.pallas_call(
        kernel,
        out_shape=jax.ShapeDtypeStruct((M, E), jnp.bfloat16),
        grid=(nb, n_layer),
        in_specs=in_specs,
        out_specs=out_spec,
        scratch_shapes=[pltpu.VMEM((tile_rows, E), jnp.float32)],   # resident residual
        compiler_params=pltpu.CompilerParams(
            dimension_semantics=("parallel", "arbitrary"),
            vmem_limit_bytes=VMEM_LIMIT),
    )(x,
      params["ln1_w"], params["ln1_b"],
      params["wqkv_t"], params["bqkv"], params["wo_t"], params["bo"],
      params["ln2_w"], params["ln2_b"],
      params["w1_t"], params["b1"], params["w2_t"], params["b2"],
      params["ln_f_w"], params["ln_f_b"])


# ------------------------------- LM head --------------------------------------
def lm_head_kernel(x_ref, emb_ref, o_ref):
    # activations are already ln_f-normalized bf16; pure (M, E) @ (E, TV) matmul
    o_ref[...] = jnp.dot(x_ref[...], emb_ref[...],
                         preferred_element_type=jnp.float32).astype(o_ref.dtype)


def gpt2_lm_head(x_norm, emb_t, *, tv=2048):
    """x_norm: (B*T, E) bf16, emb_t: (E, V) bf16 -> (B*T, V) f32 logits.

    Grid is over vocab tiles only: the activation block index is constant
    (loaded once, stays resident) and each (E, TV) embedding tile streams
    exactly once.
    """
    M, E = x_norm.shape
    V = emb_t.shape[1]
    TV = min(tv, V)                          # lane-dense vocab tile
    nv = pl.cdiv(V, TV)
    return pl.pallas_call(
        lm_head_kernel,
        out_shape=jax.ShapeDtypeStruct((M, V), jnp.float32),
        grid=(nv,),
        in_specs=[
            pl.BlockSpec((M, E), lambda v: (0, 0)),     # resident activations
            pl.BlockSpec((E, TV), lambda v: (0, v)),    # streamed embedding tile
        ],
        out_specs=pl.BlockSpec((M, TV), lambda v: (0, v)),
        compiler_params=pltpu.CompilerParams(
            dimension_semantics=("parallel",),
            vmem_limit_bytes=VMEM_LIMIT),
    )(x_norm, emb_t)


# ----------------------------- parameter init ---------------------------------
def init_params(key, vocab_size, seq_len, n_layer, n_head, n_embd):
    E = n_embd
    keys = jax.random.split(key, 1 + 4 * n_layer)
    k_emb = keys[0]

    def lin_w_t(k, out_f, in_f):
        # PyTorch-style init on (out, in), pre-transposed to (in, out), bf16.
        std = math.sqrt(1.0 / (in_f + out_f))
        w = std * jax.random.normal(k, (out_f, in_f), jnp.float32)
        return w.T.astype(jnp.bfloat16)

    token_emb = 0.005 * jax.random.normal(k_emb, (vocab_size, E), jnp.float32)

    params = {
        "token_emb": token_emb,                                   # (V, E) f32 for lookup
        "emb_t": token_emb.T.astype(jnp.bfloat16),                # (E, V) bf16 tied head (cached)
        "pos_emb": jnp.zeros((1, seq_len, E), jnp.float32),       # torch.zeros, never re-inited
        "ln_f_w": jnp.ones((1, E), jnp.float32),
        "ln_f_b": jnp.zeros((1, E), jnp.float32),
        # per-layer params stacked along a leading layer axis (fused kernel)
        "ln1_w": jnp.ones((n_layer, 1, E), jnp.float32),
        "ln1_b": jnp.zeros((n_layer, 1, E), jnp.float32),
        "wqkv_t": jnp.stack([lin_w_t(keys[1 + 4 * l + 0], 3 * E, E)
                             for l in range(n_layer)]),           # (L, E, 3E) bf16
        "bqkv": jnp.zeros((n_layer, 1, 3 * E), jnp.float32),
        "wo_t": jnp.stack([lin_w_t(keys[1 + 4 * l + 1], E, E)
                           for l in range(n_layer)]),             # (L, E, E) bf16
        "bo": jnp.zeros((n_layer, 1, E), jnp.float32),
        "ln2_w": jnp.ones((n_layer, 1, E), jnp.float32),
        "ln2_b": jnp.zeros((n_layer, 1, E), jnp.float32),
        "w1_t": jnp.stack([lin_w_t(keys[1 + 4 * l + 2], 4 * E, E)
                           for l in range(n_layer)]),             # (L, E, 4E) bf16
        "b1": jnp.zeros((n_layer, 1, 4 * E), jnp.float32),
        "w2_t": jnp.stack([lin_w_t(keys[1 + 4 * l + 3], E, 4 * E)
                           for l in range(n_layer)]),             # (L, 4E, E) bf16
        "b2": jnp.zeros((n_layer, 1, E), jnp.float32),
    }
    return params


# ------------------------------- full forward ----------------------------------
def gpt2_mini_forward(tokens, params, n_head):
    B, T = tokens.shape
    E = params["token_emb"].shape[1]
    # embedding lookup + positional embedding (plain-JAX glue); dropout = identity
    x = params["token_emb"][tokens] + params["pos_emb"][:, :T, :]
    x = x.reshape(B * T, E).astype(jnp.float32)        # fold B into the matmul M dim
    x_norm = gpt2_blocks_fused(x, params, n_head=n_head, seq_t=T, b_tile=B)
    logits = gpt2_lm_head(x_norm, params["emb_t"])     # tied-weight head (cached emb_t)
    return logits.reshape(B, T, -1)


# ----------------------------------- main --------------------------------------
if __name__ == "__main__":
    # lane-aligned toy config (E, V multiples of 128; dh=32; T multiple of 8)
    vocab_size = 128
    seq_len = 16
    n_layer = 2
    n_head = 4
    n_embd = 128
    B, T = 2, 8

    key = jax.random.PRNGKey(0)
    k_params, k_tok = jax.random.split(key)
    params = init_params(k_params, vocab_size, seq_len, n_layer, n_head, n_embd)
    tokens = jax.random.randint(k_tok, (B, T), 0, vocab_size, dtype=jnp.int32)

    logits = gpt2_mini_forward(tokens, params, n_head)
    logits = jax.block_until_ready(logits)
    assert logits.shape == (B, T, vocab_size)
    assert bool(jnp.all(jnp.isfinite(logits)))
    print("KERNEL_OK")
</pallas_src>

<mosaic_0001>
module attributes {stable_mosaic.version = 11 : i64} {
  func.func @gpt2_stack_kernel(%arg0: i32, %arg1: i32, %arg2: memref<16x128xf32, #tpu.memory_space<vmem>>, %arg3: memref<1x1x128xf32, #tpu.memory_space<vmem>>, %arg4: memref<1x1x128xf32, #tpu.memory_space<vmem>>, %arg5: memref<1x128x384xbf16, #tpu.memory_space<vmem>>, %arg6: memref<1x1x384xf32, #tpu.memory_space<vmem>>, %arg7: memref<1x128x128xbf16, #tpu.memory_space<vmem>>, %arg8: memref<1x1x128xf32, #tpu.memory_space<vmem>>, %arg9: memref<1x1x128xf32, #tpu.memory_space<vmem>>, %arg10: memref<1x1x128xf32, #tpu.memory_space<vmem>>, %arg11: memref<1x128x512xbf16, #tpu.memory_space<vmem>>, %arg12: memref<1x1x512xf32, #tpu.memory_space<vmem>>, %arg13: memref<1x512x128xbf16, #tpu.memory_space<vmem>>, %arg14: memref<1x1x128xf32, #tpu.memory_space<vmem>>, %arg15: memref<1x128xf32, #tpu.memory_space<vmem>>, %arg16: memref<1x128xf32, #tpu.memory_space<vmem>>, %arg17: memref<16x128xbf16, #tpu.memory_space<vmem>>, %arg18: memref<16x128xf32, #tpu.memory_space<vmem>>) attributes {dimension_semantics = [#tpu.dimension_semantics<parallel>, #tpu.dimension_semantics<arbitrary>], iteration_bounds = array<i64: 1, 2>, scalar_prefetch = 0 : i64, scratch_operands = 1 : i64, tpu.core_type = #tpu.core_type<tc>, window_params = [{transform_indices = @transform_0, window_bounds = array<i64: 16, 128>}, {transform_indices = @transform_1, window_bounds = array<i64: 1, 1, 128>}, {transform_indices = @transform_2, window_bounds = array<i64: 1, 1, 128>}, {transform_indices = @transform_3, window_bounds = array<i64: 1, 128, 384>}, {transform_indices = @transform_4, window_bounds = array<i64: 1, 1, 384>}, {transform_indices = @transform_5, window_bounds = array<i64: 1, 128, 128>}, {transform_indices = @transform_6, window_bounds = array<i64: 1, 1, 128>}, {transform_indices = @transform_7, window_bounds = array<i64: 1, 1, 128>}, {transform_indices = @transform_8, window_bounds = array<i64: 1, 1, 128>}, {transform_indices = @transform_9, window_bounds = array<i64: 1, 128, 512>}, {transform_indices = @transform_10, window_bounds = array<i64: 1, 1, 512>}, {transform_indices = @transform_11, window_bounds = array<i64: 1, 512, 128>}, {transform_indices = @transform_12, window_bounds = array<i64: 1, 1, 128>}, {pipeline_mode = #tpu.pipeline_mode<synchronous>, transform_indices = @transform_13, window_bounds = array<i64: 1, 128>}, {pipeline_mode = #tpu.pipeline_mode<synchronous>, transform_indices = @transform_14, window_bounds = array<i64: 1, 128>}, {transform_indices = @transform_15, window_bounds = array<i64: 16, 128>}]} {
    %c0_i32 = arith.constant 0 : i32
    %0 = arith.cmpi eq, %arg1, %c0_i32 : i32
    %1 = arith.extui %0 : i1 to i32
    %c0_i32_0 = arith.constant 0 : i32
    %2 = arith.cmpi ne, %1, %c0_i32_0 : i32
    scf.if %2 {
      %c0_64 = arith.constant 0 : index
      %c0_65 = arith.constant 0 : index
      %138 = vector.load %arg2[%c0_64, %c0_65] : memref<16x128xf32, #tpu.memory_space<vmem>>, vector<16x128xf32>
      %c0_66 = arith.constant 0 : index
      %c0_67 = arith.constant 0 : index
      %139 = vector.load %arg18[%c0_66, %c0_67] : memref<16x128xf32, #tpu.memory_space<vmem>>, vector<16x128xf32>
      tpu.vector_store %arg18[%c0_66, %c0_67], %138 {strides = array<i32>} : memref<16x128xf32, #tpu.memory_space<vmem>>, vector<16x128xf32>,
    } else {
    }
    %c0 = arith.constant 0 : index
    %c0_1 = arith.constant 0 : index
    %3 = vector.load %arg18[%c0, %c0_1] : memref<16x128xf32, #tpu.memory_space<vmem>>, vector<16x128xf32>
    %4 = tpu.iota {dimensions = array<i32: 0>} : vector<8x8xi32>
    %5 = tpu.iota {dimensions = array<i32: 1>} : vector<8x8xi32>
    %6 = arith.cmpi sge, %4, %5 : vector<8x8xi32>
    %cst = arith.constant 0.000000e+00 : f32
    %cst_2 = arith.constant -1.000000e+30 : f32
    %7 = vector.broadcast %cst : f32 to vector<8x8xf32>
    %8 = vector.broadcast %cst_2 : f32 to vector<8x8xf32>
    %9 = arith.select %6, %7, %8 : vector<8x8xi1>, vector<8x8xf32>
    %c0_3 = arith.constant 0 : index
    %c0_4 = arith.constant 0 : index
    %c0_5 = arith.constant 0 : index
    %10 = vector.load %arg3[%c0_3, %c0_4, %c0_5] : memref<1x1x128xf32, #tpu.memory_space<vmem>>, vector<1x1x128xf32>
    %11 = vector.shape_cast %10 : vector<1x1x128xf32> to vector<1x128xf32>
    %c0_6 = arith.constant 0 : index
    %c0_7 = arith.constant 0 : index
    %c0_8 = arith.constant 0 : index
    %12 = vector.load %arg4[%c0_6, %c0_7, %c0_8] : memref<1x1x128xf32, #tpu.memory_space<vmem>>, vector<1x1x128xf32>
    %13 = vector.shape_cast %12 : vector<1x1x128xf32> to vector<1x128xf32>
    %cst_9 = arith.constant dense<0.000000e+00> : vector<16xf32>
    %14 = vector.multi_reduction <add>, %3, %cst_9 [1] : vector<16x128xf32> to vector<16xf32>
    %15 = vector.shape_cast %14 : vector<16xf32> to vector<16x1xf32>
    %cst_10 = arith.constant 1.280000e+02 : f32
    %16 = vector.broadcast %cst_10 : f32 to vector<16x1xf32>
    %17 = arith.divf %15, %16 : vector<16x1xf32>
    %18 = vector.broadcast %17 : vector<16x1xf32> to vector<16x128xf32>
    %19 = arith.subf %3, %18 : vector<16x128xf32>
    %20 = arith.mulf %19, %19 : vector<16x128xf32>
    %cst_11 = arith.constant dense<0.000000e+00> : vector<16xf32>
    %21 = vector.multi_reduction <add>, %20, %cst_11 [1] : vector<16x128xf32> to vector<16xf32>
    %22 = vector.shape_cast %21 : vector<16xf32> to vector<16x1xf32>
    %cst_12 = arith.constant 1.280000e+02 : f32
    %23 = vector.broadcast %cst_12 : f32 to vector<16x1xf32>
    %24 = arith.divf %22, %23 : vector<16x1xf32>
    %cst_13 = arith.constant 9.99999974E-6 : f32
    %25 = vector.broadcast %cst_13 : f32 to vector<16x1xf32>
    %26 = arith.addf %24, %25 : vector<16x1xf32>
    %27 = math.rsqrt %26 : vector<16x1xf32>
    %28 = vector.broadcast %27 : vector<16x1xf32> to vector<16x128xf32>
    %29 = arith.mulf %19, %28 : vector<16x128xf32>
    %30 = vector.broadcast %11 : vector<1x128xf32> to vector<16x128xf32>
    %31 = arith.mulf %29, %30 : vector<16x128xf32>
    %32 = vector.broadcast %13 : vector<1x128xf32> to vector<16x128xf32>
    %33 = arith.addf %31, %32 : vector<16x128xf32>
    %34 = arith.truncf %33 : vector<16x128xf32> to vector<16x128xbf16>
    %c0_14 = arith.constant 0 : index
    %c0_15 = arith.constant 0 : index
    %c0_16 = arith.constant 0 : index
    %35 = vector.load %arg5[%c0_14, %c0_15, %c0_16] : memref<1x128x384xbf16, #tpu.memory_space<vmem>>, vector<1x128x384xbf16>
    %36 = vector.shape_cast %35 : vector<1x128x384xbf16> to vector<128x384xbf16>
    %cst_17 = arith.constant dense<0.000000e+00> : vector<16x384xf32>
    %37 = tpu.matmul %34, %36, %cst_17 {dimension_numbers = #tpu.dot_dimension_numbers<[1], [0], [0], [1], [0, 0, 1, 1], [], []>} : vector<16x128xbf16>, vector<128x384xbf16>, vector<16x384xf32> -> vector<16x384xf32>
    %c0_18 = arith.constant 0 : index
    %c0_19 = arith.constant 0 : index
    %c0_20 = arith.constant 0 : index
    %38 = vector.load %arg6[%c0_18, %c0_19, %c0_20] : memref<1x1x384xf32, #tpu.memory_space<vmem>>, vector<1x1x384xf32>
    %39 = vector.shape_cast %38 : vector<1x1x384xf32> to vector<1x384xf32>
    %40 = vector.broadcast %39 : vector<1x384xf32> to vector<16x384xf32>
    %41 = arith.addf %37, %40 : vector<16x384xf32>
    %42 = arith.truncf %41 : vector<16x384xf32> to vector<16x384xbf16>
    %43 = vector.extract_strided_slice %42 {offsets = [0, 0], sizes = [16, 128], strides = [1, 1]} : vector<16x384xbf16> to vector<16x128xbf16>
    %44 = vector.shape_cast %43 : vector<16x128xbf16> to vector<2x8x4x32xbf16>
    %45 = tpu.transpose %44, [0, 2, 1, 3] : vector<2x8x4x32xbf16> -> vector<2x4x8x32xbf16>
    %46 = vector.shape_cast %45 : vector<2x4x8x32xbf16> to vector<8x8x32xbf16>
    %47 = vector.extract_strided_slice %42 {offsets = [0, 128], sizes = [16, 128], strides = [1, 1]} : vector<16x384xbf16> to vector<16x128xbf16>
    %48 = vector.shape_cast %47 : vector<16x128xbf16> to vector<2x8x4x32xbf16>
    %49 = tpu.transpose %48, [0, 2, 1, 3] : vector<2x8x4x32xbf16> -> vector<2x4x8x32xbf16>
    %50 = vector.shape_cast %49 : vector<2x4x8x32xbf16> to vector<8x8x32xbf16>
    %51 = vector.extract_strided_slice %42 {offsets = [0, 256], sizes = [16, 128], strides = [1, 1]} : vector<16x384xbf16> to vector<16x128xbf16>
    %52 = vector.shape_cast %51 : vector<16x128xbf16> to vector<2x8x4x32xbf16>
    %53 = tpu.transpose %52, [0, 2, 1, 3] : vector<2x8x4x32xbf16> -> vector<2x4x8x32xbf16>
    %54 = vector.shape_cast %53 : vector<2x4x8x32xbf16> to vector<8x8x32xbf16>
    "tpu.trace_start"() <{level = 10 : i32, message = "bqd,bkd->bqk"}> : () -> ()
    %cst_21 = arith.constant dense<0.000000e+00> : vector<8x8x8xf32>
    %55 = tpu.matmul %46, %50, %cst_21 {dimension_numbers = #tpu.dot_dimension_numbers<[2], [2], [1], [1], [0, 0, 0, 1, 1, 1], [0], [0]>} : vector<8x8x32xbf16>, vector<8x8x32xbf16>, vector<8x8x8xf32> -> vector<8x8x8xf32>
    "tpu.trace_stop"() : () -> ()
    %cst_22 = arith.constant 0.176776692 : f32
    %56 = vector.broadcast %cst_22 : f32 to vector<8x8x8xf32>
    %57 = arith.mulf %55, %56 : vector<8x8x8xf32>
    %58 = vector.shape_cast %9 : vector<8x8xf32> to vector<1x8x8xf32>
    %59 = vector.broadcast %58 : vector<1x8x8xf32> to vector<8x8x8xf32>
    %60 = arith.addf %57, %59 : vector<8x8x8xf32>
    %cst_23 = arith.constant dense<0xFF800000> : vector<8x8xf32>
    %61 = vector.multi_reduction <maximumf>, %60, %cst_23 [2] : vector<8x8x8xf32> to vector<8x8xf32>
    %62 = vector.shape_cast %61 : vector<8x8xf32> to vector<8x8x1xf32>
    %63 = vector.broadcast %62 : vector<8x8x1xf32> to vector<8x8x8xf32>
    %64 = arith.subf %60, %63 : vector<8x8x8xf32>
    %65 = math.exp %64 : vector<8x8x8xf32>
    %cst_24 = arith.constant dense<0.000000e+00> : vector<8x8xf32>
    %66 = vector.multi_reduction <add>, %65, %cst_24 [2] : vector<8x8x8xf32> to vector<8x8xf32>
    %67 = vector.shape_cast %66 : vector<8x8xf32> to vector<8x8x1xf32>
    %68 = tpu.reciprocal %67 {approx = true} : vector<8x8x1xf32> -> vector<8x8x1xf32>
    %69 = vector.broadcast %68 : vector<8x8x1xf32> to vector<8x8x8xf32>
    %70 = arith.mulf %65, %69 : vector<8x8x8xf32>
    %71 = arith.truncf %70 : vector<8x8x8xf32> to vector<8x8x8xbf16>
    "tpu.trace_start"() <{level = 10 : i32, message = "bqk,bkd->bqd"}> : () -> ()
    %cst_25 = arith.constant dense<0.000000e+00> : vector<8x8x32xf32>
    %72 = tpu.matmul %71, %54, %cst_25 {dimension_numbers = #tpu.dot_dimension_numbers<[2], [1], [1], [2], [0, 0, 0, 1, 1, 2], [0], [0]>} : vector<8x8x8xbf16>, vector<8x8x32xbf16>, vector<8x8x32xf32> -> vector<8x8x32xf32>
    "tpu.trace_stop"() : () -> ()
    %73 = vector.shape_cast %72 : vector<8x8x32xf32> to vector<2x4x8x32xf32>
    %74 = tpu.transpose %73, [0, 2, 1, 3] : vector<2x4x8x32xf32> -> vector<2x8x4x32xf32>
    %75 = vector.shape_cast %74 : vector<2x8x4x32xf32> to vector<16x128xf32>
    %76 = arith.truncf %75 : vector<16x128xf32> to vector<16x128xbf16>
    %c0_26 = arith.constant 0 : index
    %c0_27 = arith.constant 0 : index
    %c0_28 = arith.constant 0 : index
    %77 = vector.load %arg7[%c0_26, %c0_27, %c0_28] : memref<1x128x128xbf16, #tpu.memory_space<vmem>>, vector<1x128x128xbf16>
    %78 = vector.shape_cast %77 : vector<1x128x128xbf16> to vector<128x128xbf16>
    %cst_29 = arith.constant dense<0.000000e+00> : vector<16x128xf32>
    %79 = tpu.matmul %76, %78, %cst_29 {dimension_numbers = #tpu.dot_dimension_numbers<[1], [0], [0], [1], [0, 0, 1, 1], [], []>} : vector<16x128xbf16>, vector<128x128xbf16>, vector<16x128xf32> -> vector<16x128xf32>
    %c0_30 = arith.constant 0 : index
    %c0_31 = arith.constant 0 : index
    %c0_32 = arith.constant 0 : index
    %80 = vector.load %arg8[%c0_30, %c0_31, %c0_32] : memref<1x1x128xf32, #tpu.memory_space<vmem>>, vector<1x1x128xf32>
    %81 = vector.shape_cast %80 : vector<1x1x128xf32> to vector<1x128xf32>
    %82 = vector.broadcast %81 : vector<1x128xf32> to vector<16x128xf32>
    %83 = arith.addf %79, %82 : vector<16x128xf32>
    %84 = arith.addf %3, %83 : vector<16x128xf32>
    %c0_33 = arith.constant 0 : index
    %c0_34 = arith.constant 0 : index
    %c0_35 = arith.constant 0 : index
    %85 = vector.load %arg9[%c0_33, %c0_34, %c0_35] : memref<1x1x128xf32, #tpu.memory_space<vmem>>, vector<1x1x128xf32>
    %86 = vector.shape_cast %85 : vector<1x1x128xf32> to vector<1x128xf32>
    %c0_36 = arith.constant 0 : index
    %c0_37 = arith.constant 0 : index
    %c0_38 = arith.constant 0 : index
    %87 = vector.load %arg10[%c0_36, %c0_37, %c0_38] : memref<1x1x128xf32, #tpu.memory_space<vmem>>, vector<1x1x128xf32>
    %88 = vector.shape_cast %87 : vector<1x1x128xf32> to vector<1x128xf32>
    %cst_39 = arith.constant dense<0.000000e+00> : vector<16xf32>
    %89 = vector.multi_reduction <add>, %84, %cst_39 [1] : vector<16x128xf32> to vector<16xf32>
    %90 = vector.shape_cast %89 : vector<16xf32> to vector<16x1xf32>
    %cst_40 = arith.constant 1.280000e+02 : f32
    %91 = vector.broadcast %cst_40 : f32 to vector<16x1xf32>
    %92 = arith.divf %90, %91 : vector<16x1xf32>
    %93 = vector.broadcast %92 : vector<16x1xf32> to vector<16x128xf32>
    %94 = arith.subf %84, %93 : vector<16x128xf32>
    %95 = arith.mulf %94, %94 : vector<16x128xf32>
    %cst_41 = arith.constant dense<0.000000e+00> : vector<16xf32>
    %96 = vector.multi_reduction <add>, %95, %cst_41 [1] : vector<16x128xf32> to vector<16xf32>
    %97 = vector.shape_cast %96 : vector<16xf32> to vector<16x1xf32>
    %cst_42 = arith.constant 1.280000e+02 : f32
    %98 = vector.broadcast %cst_42 : f32 to vector<16x1xf32>
    %99 = arith.divf %97, %98 : vector<16x1xf32>
    %cst_43 = arith.constant 9.99999974E-6 : f32
    %100 = vector.broadcast %cst_43 : f32 to vector<16x1xf32>
    %101 = arith.addf %99, %100 : vector<16x1xf32>
    %102 = math.rsqrt %101 : vector<16x1xf32>
    %103 = vector.broadcast %102 : vector<16x1xf32> to vector<16x128xf32>
    %104 = arith.mulf %94, %103 : vector<16x128xf32>
    %105 = vector.broadcast %86 : vector<1x128xf32> to vector<16x128xf32>
    %106 = arith.mulf %104, %105 : vector<16x128xf32>
    %107 = vector.broadcast %88 : vector<1x128xf32> to vector<16x128xf32>
    %108 = arith.addf %106, %107 : vector<16x128xf32>
    %109 = arith.truncf %108 : vector<16x128xf32> to vector<16x128xbf16>
    %c0_44 = arith.constant 0 : index
    %c0_45 = arith.constant 0 : index
    %c0_46 = arith.constant 0 : index
    %110 = vector.load %arg11[%c0_44, %c0_45, %c0_46] : memref<1x128x512xbf16, #tpu.memory_space<vmem>>, vector<1x128x512xbf16>
    %111 = vector.shape_cast %110 : vector<1x128x512xbf16> to vector<128x512xbf16>
    %cst_47 = arith.constant dense<0.000000e+00> : vector<16x512xf32>
    %112 = tpu.matmul %109, %111, %cst_47 {dimension_numbers = #tpu.dot_dimension_numbers<[1], [0], [0], [1], [0, 0, 1, 1], [], []>} : vector<16x128xbf16>, vector<128x512xbf16>, vector<16x512xf32> -> vector<16x512xf32>
    %c0_48 = arith.constant 0 : index
    %c0_49 = arith.constant 0 : index
    %c0_50 = arith.constant 0 : index
    %113 = vector.load %arg12[%c0_48, %c0_49, %c0_50] : memref<1x1x512xf32, #tpu.memory_space<vmem>>, vector<1x1x512xf32>
    %114 = vector.shape_cast %113 : vector<1x1x512xf32> to vector<1x512xf32>
    %115 = vector.broadcast %114 : vector<1x512xf32> to vector<16x512xf32>
    %116 = arith.addf %112, %115 : vector<16x512xf32>
    %cst_51 = arith.constant 5.000000e-01 : f32
    %117 = vector.broadcast %cst_51 : f32 to vector<16x512xf32>
    %118 = arith.mulf %117, %116 : vector<16x512xf32>
    %cst_52 = arith.constant 0.707106769 : f32
    %119 = vector.broadcast %cst_52 : f32 to vector<16x512xf32>
    %120 = arith.mulf %116, %119 : vector<16x512xf32>
    %121 = math.erf %120 : vector<16x512xf32>
    %cst_53 = arith.constant 1.000000e+00 : f32
    %122 = vector.broadcast %cst_53 : f32 to vector<16x512xf32>
    %123 = arith.addf %122, %121 : vector<16x512xf32>
    %124 = arith.mulf %118, %123 : vector<16x512xf32>
    %125 = arith.truncf %124 : vector<16x512xf32> to vector<16x512xbf16>
    %c0_54 = arith.constant 0 : index
    %c0_55 = arith.constant 0 : index
    %c0_56 = arith.constant 0 : index
    %126 = vector.load %arg13[%c0_54, %c0_55, %c0_56] : memref<1x512x128xbf16, #tpu.memory_space<vmem>>, vector<1x512x128xbf16>
    %127 = vector.shape_cast %126 : vector<1x512x128xbf16> to vector<512x128xbf16>
    %cst_57 = arith.constant dense<0.000000e+00> : vector<16x128xf32>
    %128 = tpu.matmul %125, %127, %cst_57 {dimension_numbers = #tpu.dot_dimension_numbers<[1], [0], [0], [1], [0, 0, 1, 1], [], []>} : vector<16x512xbf16>, vector<512x128xbf16>, vector<16x128xf32> -> vector<16x128xf32>
    %c0_58 = arith.constant 0 : index
    %c0_59 = arith.constant 0 : index
    %c0_60 = arith.constant 0 : index
    %129 = vector.load %arg14[%c0_58, %c0_59, %c0_60] : memref<1x1x128xf32, #tpu.memory_space<vmem>>, vector<1x1x128xf32>
    %130 = vector.shape_cast %129 : vector<1x1x128xf32> to vector<1x128xf32>
    %131 = vector.broadcast %130 : vector<1x128xf32> to vector<16x128xf32>
    %132 = arith.addf %128, %131 : vector<16x128xf32>
    %133 = arith.addf %84, %132 : vector<16x128xf32>
    %c0_61 = arith.constant 0 : index
    %c0_62 = arith.constant 0 : index
    %134 = vector.load %arg18[%c0_61, %c0_62] : memref<16x128xf32, #tpu.memory_space<vmem>>, vector<16x128xf32>
    tpu.vector_store %arg18[%c0_61, %c0_62], %133 {strides = array<i32>} : memref<16x128xf32, #tpu.memory_space<vmem>>, vector<16x128xf32>,
    %c1_i32 = arith.constant 1 : i32
    %135 = arith.cmpi eq, %arg1, %c1_i32 : i32
    %136 = arith.extui %135 : i1 to i32
    %c0_i32_63 = arith.constant 0 : i32
    %137 = arith.cmpi ne, %136, %c0_i32_63 : i32
    scf.if %137 {
      %c0_64 = arith.constant 0 : index
      %c0_65 = arith.constant 0 : index
      %138 = vector.load %arg15[%c0_64, %c0_65] : memref<1x128xf32, #tpu.memory_space<vmem>>, vector<1x128xf32>
      %c0_66 = arith.constant 0 : index
      %c0_67 = arith.constant 0 : index
      %139 = vector.load %arg16[%c0_66, %c0_67] : memref<1x128xf32, #tpu.memory_space<vmem>>, vector<1x128xf32>
      %cst_68 = arith.constant dense<0.000000e+00> : vector<16xf32>
      %140 = vector.multi_reduction <add>, %133, %cst_68 [1] : vector<16x128xf32> to vector<16xf32>
      %141 = vector.shape_cast %140 : vector<16xf32> to vector<16x1xf32>
      %cst_69 = arith.constant 1.280000e+02 : f32
      %142 = vector.broadcast %cst_69 : f32 to vector<16x1xf32>
      %143 = arith.divf %141, %142 : vector<16x1xf32>
      %144 = vector.broadcast %143 : vector<16x1xf32> to vector<16x128xf32>
      %145 = arith.subf %133, %144 : vector<16x128xf32>
      %146 = arith.mulf %145, %145 : vector<16x128xf32>
      %cst_70 = arith.constant dense<0.000000e+00> : vector<16xf32>
      %147 = vector.multi_reduction <add>, %146, %cst_70 [1] : vector<16x128xf32> to vector<16xf32>
      %148 = vector.shape_cast %147 : vector<16xf32> to vector<16x1xf32>
      %cst_71 = arith.constant 1.280000e+02 : f32
      %149 = vector.broadcast %cst_71 : f32 to vector<16x1xf32>
      %150 = arith.divf %148, %149 : vector<16x1xf32>
      %cst_72 = arith.constant 9.99999974E-6 : f32
      %151 = vector.broadcast %cst_72 : f32 to vector<16x1xf32>
      %152 = arith.addf %150, %151 : vector<16x1xf32>
      %153 = math.rsqrt %152 : vector<16x1xf32>
      %154 = vector.broadcast %153 : vector<16x1xf32> to vector<16x128xf32>
      %155 = arith.mulf %145, %154 : vector<16x128xf32>
      %156 = vector.broadcast %138 : vector<1x128xf32> to vector<16x128xf32>
      %157 = arith.mulf %155, %156 : vector<16x128xf32>
      %158 = vector.broadcast %139 : vector<1x128xf32> to vector<16x128xf32>
      %159 = arith.addf %157, %158 : vector<16x128xf32>
      %160 = arith.truncf %159 : vector<16x128xf32> to vector<16x128xbf16>
      %c0_73 = arith.constant 0 : index
      %c0_74 = arith.constant 0 : index
      %161 = vector.load %arg17[%c0_73, %c0_74] : memref<16x128xbf16, #tpu.memory_space<vmem>>, vector<16x128xbf16>
      tpu.vector_store %arg17[%c0_73, %c0_74], %160 {strides = array<i32>} : memref<16x128xbf16, #tpu.memory_space<vmem>>, vector<16x128xbf16>,
    } else {
    }
    return
  }
  func.func @transform_0(%arg0: i32, %arg1: i32) -> (i32, i32) {
    %c0_i32 = arith.constant 0 : i32
    %c0_i32_0 = arith.constant 0 : i32
    return %arg0, %c0_i32 : i32, i32
  }
  func.func @transform_1(%arg0: i32, %arg1: i32) -> (i32, i32, i32) {
    %c0_i32 = arith.constant 0 : i32
    %c0_i32_0 = arith.constant 0 : i32
    %c0_i32_1 = arith.constant 0 : i32
    return %arg1, %c0_i32, %c0_i32_0 : i32, i32, i32
  }
  func.func @transform_2(%arg0: i32, %arg1: i32) -> (i32, i32, i32) {
    %c0_i32 = arith.constant 0 : i32
    %c0_i32_0 = arith.constant 0 : i32
    %c0_i32_1 = arith.constant 0 : i32
    return %arg1, %c0_i32, %c0_i32_0 : i32, i32, i32
  }
  func.func @transform_3(%arg0: i32, %arg1: i32) -> (i32, i32, i32) {
    %c0_i32 = arith.constant 0 : i32
    %c0_i32_0 = arith.constant 0 : i32
    %c0_i32_1 = arith.constant 0 : i32
    return %arg1, %c0_i32, %c0_i32_0 : i32, i32, i32
  }
  func.func @transform_4(%arg0: i32, %arg1: i32) -> (i32, i32, i32) {
    %c0_i32 = arith.constant 0 : i32
    %c0_i32_0 = arith.constant 0 : i32
    %c0_i32_1 = arith.constant 0 : i32
    return %arg1, %c0_i32, %c0_i32_0 : i32, i32, i32
  }
  func.func @transform_5(%arg0: i32, %arg1: i32) -> (i32, i32, i32) {
    %c0_i32 = arith.constant 0 : i32
    %c0_i32_0 = arith.constant 0 : i32
    %c0_i32_1 = arith.constant 0 : i32
    return %arg1, %c0_i32, %c0_i32_0 : i32, i32, i32
  }
  func.func @transform_6(%arg0: i32, %arg1: i32) -> (i32, i32, i32) {
    %c0_i32 = arith.constant 0 : i32
    %c0_i32_0 = arith.constant 0 : i32
    %c0_i32_1 = arith.constant 0 : i32
    return %arg1, %c0_i32, %c0_i32_0 : i32, i32, i32
  }
  func.func @transform_7(%arg0: i32, %arg1: i32) -> (i32, i32, i32) {
    %c0_i32 = arith.constant 0 : i32
    %c0_i32_0 = arith.constant 0 : i32
    %c0_i32_1 = arith.constant 0 : i32
    return %arg1, %c0_i32, %c0_i32_0 : i32, i32, i32
  }
  func.func @transform_8(%arg0: i32, %arg1: i32) -> (i32, i32, i32) {
    %c0_i32 = arith.constant 0 : i32
    %c0_i32_0 = arith.constant 0 : i32
    %c0_i32_1 = arith.constant 0 : i32
    return %arg1, %c0_i32, %c0_i32_0 : i32, i32, i32
  }
  func.func @transform_9(%arg0: i32, %arg1: i32) -> (i32, i32, i32) {
    %c0_i32 = arith.constant 0 : i32
    %c0_i32_0 = arith.constant 0 : i32
    %c0_i32_1 = arith.constant 0 : i32
    return %arg1, %c0_i32, %c0_i32_0 : i32, i32, i32
  }
  func.func @transform_10(%arg0: i32, %arg1: i32) -> (i32, i32, i32) {
    %c0_i32 = arith.constant 0 : i32
    %c0_i32_0 = arith.constant 0 : i32
    %c0_i32_1 = arith.constant 0 : i32
    return %arg1, %c0_i32, %c0_i32_0 : i32, i32, i32
  }
  func.func @transform_11(%arg0: i32, %arg1: i32) -> (i32, i32, i32) {
    %c0_i32 = arith.constant 0 : i32
    %c0_i32_0 = arith.constant 0 : i32
    %c0_i32_1 = arith.constant 0 : i32
    return %arg1, %c0_i32, %c0_i32_0 : i32, i32, i32
  }
  func.func @transform_12(%arg0: i32, %arg1: i32) -> (i32, i32, i32) {
    %c0_i32 = arith.constant 0 : i32
    %c0_i32_0 = arith.constant 0 : i32
    %c0_i32_1 = arith.constant 0 : i32
    return %arg1, %c0_i32, %c0_i32_0 : i32, i32, i32
  }
  func.func @transform_13(%arg0: i32, %arg1: i32) -> (i32, i32) {
    %c0_i32 = arith.constant 0 : i32
    %c0_i32_0 = arith.constant 0 : i32
    %c0_i32_1 = arith.constant 0 : i32
    return %c0_i32, %c0_i32_0 : i32, i32
  }
  func.func @transform_14(%arg0: i32, %arg1: i32) -> (i32, i32) {
    %c0_i32 = arith.constant 0 : i32
    %c0_i32_0 = arith.constant 0 : i32
    %c0_i32_1 = arith.constant 0 : i32
    return %c0_i32, %c0_i32_0 : i32, i32
  }
  func.func @transform_15(%arg0: i32, %arg1: i32) -> (i32, i32) {
    %c0_i32 = arith.constant 0 : i32
    %c0_i32_0 = arith.constant 0 : i32
    return %arg0, %c0_i32 : i32, i32
  }
}

</mosaic_0001>

<bundles_post_ra>
// kernel: tpu_custom_call.1
= control target key start
LH: loop header
LB: loop body
LE: loop exit
PB: predicated region body
PF: predicated region fallthrough
CT: control target
= control target key end

     0   :  { %s6370_s0 = inlined_call_operand.hbm [shape: f32[16,128], index: 0, kind: input, shape index: {}]   ;;  %s6371_s1 = inlined_call_operand.hbm [shape: f32[2,1,128], index: 1, kind: input, shape index: {}]   ;;  %s6372_s2 = inlined_call_operand.hbm [shape: f32[2,1,128], index: 2, kind: input, shape index: {}]   ;;  %s6373_s3 = inlined_call_operand.hbm [shape: bf16[2,128,384], index: 3, kind: input, shape index: {}]   ;;  %s6374_s4 = inlined_call_operand.vmem [shape: f32[2,1,384], index: 4, kind: input, shape index: {}]   ;;  %s6375_s5 = inlined_call_operand.hbm [shape: bf16[2,128,128], index: 5, kind: input, shape index: {}]   ;;  %s6376_s6 = inlined_call_operand.vmem [shape: f32[2,1,128], index: 6, kind: input, shape index: {}]   ;;  %s6377_s7 = inlined_call_operand.vmem [shape: f32[2,1,128], index: 7, kind: input, shape index: {}]   ;;  %s6378_s8 = inlined_call_operand.vmem [shape: f32[2,1,128], index: 8, kind: input, shape index: {}]   ;;  %s6379_s9 = inlined_call_operand.hbm [shape: bf16[2,128,512], index: 9, kind: input, shape index: {}]   ;;  %s6380_s10 = inlined_call_operand.vmem [shape: f32[2,1,512], index: 10, kind: input, shape index: {}]   ;;  %s6381_s11 = inlined_call_operand.hbm [shape: bf16[2,512,128], index: 11, kind: input, shape index: {}]   ;;  %s6382_s12 = inlined_call_operand.vmem [shape: f32[2,1,128], index: 12, kind: input, shape index: {}]   ;;  %s6383_s13 = inlined_call_operand.vmem [shape: f32[1,128], index: 13, kind: input, shape index: {}]   ;;  %s6384_s14 = inlined_call_operand.vmem [shape: f32[1,128], index: 14, kind: input, shape index: {}]   ;;  %s6385_s15 = inlined_call_operand.hbm [shape: bf16[16,128], index: 15, kind: output, shape index: {}]  }
   0x1   :  { %6401 = sst [smem:[#allocation26_spill]] %s6370_s0 }
   0x2   :  { %6402 = sst [smem:[#allocation27_spill]] %s6371_s1 }
   0x3   :  { %6403 = sst [smem:[#allocation28_spill]] %s6372_s2 }
   0x4   :  { %6404 = sst [smem:[#allocation29_spill]] %s6373_s3 }
   0x5   :  { %6405 = sst [smem:[#allocation30_spill]] %s6374_s4 }
   0x6   :  { %6406 = sst [smem:[#allocation31_spill]] %s6375_s5 }
   0x7   :  { %6407 = sst [smem:[#allocation32_spill]] %s6377_s7 }
   0x8   :  { %6408 = sst [smem:[#allocation33_spill]] %s6378_s8 }
   0x9   :  { %6409 = sst [smem:[#allocation34_spill]] %s6379_s9 }
   0xa   :  { %6410 = sst [smem:[#allocation35_spill]] %s6380_s10 }
   0xb   :  { %6411 = sst [smem:[#allocation36_spill]] %s6381_s11 }
   0xc   :  { %6412 = sst [smem:[#allocation37_spill]] %s6382_s12 }
   0xd   :  { %6413 = sst [smem:[#allocation38_spill]] %s6383_s13 }
   0xe   :  { %6414 = sst [smem:[#allocation39_spill]] %s6384_s14 }
   0xf   :  { %6415 = sst [smem:[#allocation40_spill]] %s6385_s15 }
  0x10   :  { %20 = vsyncpa [#allocation4], 0 }
  0x11   :  { %21 = vsyncpa [#allocation7], 0 }
  0x12   :  { %23 = vsyncpa [#allocation7 + $0x1], 0 }
  0x13   :  { %24 = vsyncpa [#allocation10], 0 }
  0x14   :  { %26 = vsyncpa [#allocation10 + $0x1], 0 }
  0x15   :  { %27 = vsyncpa [#allocation13], 0 }
  0x16   :  { %29 = vsyncpa [#allocation13 + $0x1], 0 }
  0x17   :  { %30 = vsyncpa [#allocation5], 0  ;;  %s5414_s18 = smov 0   ;;  %s5416_s19 = smov 0  }
  0x18   :  { %s5418_s20 = smov 0   ;;  %s5420_s21 = smov 0  }
  0x19   :  { %s5422_s22 = smov 0   ;;  %s5424_s23 = smov 0  }
  0x1a LB: > { %6416 = sst [smem:[#allocation21_spill]] %s5294_s20  ;;  %s45_s24 = sadd.s32 1, %s5302_s22  ;;  %s5306_s23 = sphi %s5424_s23, %s36_s23   ;;  %s5302_s22 = sphi %s5422_s22, %s6461_s22   ;;  %s5298_s21 = sphi %s5420_s21, %s6460_s21   ;;  %s5294_s20 = sphi %s5418_s20, %s6459_s20   ;;  %s5290_s19 = sphi %s5416_s19, %s6463_s19   ;;  %s5286_s18 = sphi %s5414_s18, %s6462_s18  }
  0x1b   : > { %6417 = sst [smem:[#allocation22_spill]] %s5302_s22  ;;  %s81_s25 = sadd.s32 1, %s5294_s20 }
  0x1c   : > { %6418 = sst [smem:[#allocation23_spill]] %s5306_s23  ;;  %p46_p0 = scmp.ge.s32.totalorder %s45_s24, 2 }
  0x1d   : > { %p88_p1 = scmp.ne.s32.totalorder %s5294_s20, %s5290_s19  ;;  %p89_p2 = scmp.eq.s32.totalorder %s5306_s23, 0 }
  0x1e   : > { %s6465_s24 = smov (%p46_p0, %s45_s24), 0  ;;  %p4737_p4 = scmp.lt.s32.totalorder %s5306_s23, 2 }
  0x1f   : > { %6419 = sst [smem:[#allocation24_spill]] %s6465_s24  ;;  %p90_p3 = por %p89_p2, %p88_p1 }
  0x20   : > { %s78_s26 = ssub.s32 %s5302_s22, %s6465_s24  ;;  %s5455_s27 = sand.u32 1, %s5306_s23  }
  0x21   : > { %p79_p5 = scmp.eq.s32.totalorder %s78_s26, 0  ;;  %s5458_s28 = sand.u32 1, %s5294_s20  }
  0x22   : > { %s4287_s29 = sshll.u32 %s5302_s22, 4  ;;  %s6421_s1 = sld [smem:[#allocation27_spill]] }
  0x23   : > { %s5462_s30 = scalar_select %p79_p5, %s5294_s20, %s81_s25  }
  0x24   : > { %s497_s24 = scalar_lea.vmem [#allocation6], %s5458_s28  ;;  %p5470_p6 = pnand %p4737_p4, %p90_p3 }
  0x25   : > { %6420 = sst [smem:[#allocation25_spill]] %s5462_s30  ;;  %s504_s14 = sshll.u32 %s497_s24, 4  ;;  %s5474_s14 = int_to_ptr.vmem [resolvable:$true] %s504_s14 }
  0x26   : > { %s6422_s13 = scalar_select %p5470_p6, 1, 0 }
  0x27   : > { %s6423_s2 = sld [smem:[#allocation28_spill]]  ;;  %s6389_s16 = scalar_lea.sflag [#allocation7], %s5455_s27 }
  0x28   : > { %s5467_s15 = scalar_lea.hbm %s6421_s1, %s4287_s29  ;;  %p5486_p8 = pneg %p5470_p6 }
  0x29   : > { %s5006_s17 = scalar_lea.hbm %s5467_s15, 16  ;;  %s5011_s10 = scalar_lea.hbm %s6421_s1, 32 }
  0x2a   : > { %p5007_p7 = scmp.ne.s32.totalorder %s5467_s15, %s5006_s17  ;;  %p5012_p11 = scmp.lt.u32.totalorder %s5467_s15, %s6421_s1 }
  0x2b   : > { %s6424_s20 = scalar_select %p5486_p8, 1, 0 }
  0x2c   : > { %p5009_p9 = pnand %p5486_p8, %p5007_p7  ;;  %p5013_p12 = scmp.lt.u32.totalorder %s5011_s10, %s5006_s17 }
  0x2d   : > { %s5479_s30 = scalar_lea.hbm %s6423_s2, %s4287_s29  ;;  %p5015_p0 = scmp.lt.u32.totalorder %s5006_s17, %s5467_s15 }
  0x2e   : > { %p5010_p10 = pneg %p5009_p9  ;;  %p5014_p13 = por %p5013_p12, %p5012_p11 }
  0x30   : > { %p5016_p1 = por %p5015_p0, %p5014_p13 }
  0x32   : > { %p5017_p2 = pnand %p5016_p1, %p5010_p10 }
  0x34   : > { %5020 = shalt.err (!%p5017_p2)
}
  0x35   : > { %s5021_s29 = scalar_lea.vmem %s5474_s14, 16  ;;  %s5308_s12 = smov [#allocation6]  }
  0x36   : > { %p5022_p3 = scmp.ne.s32.totalorder %s5474_s14, %s5021_s29  ;;  %s5026_s26 = sshll.u32 %s5308_s12, 4  ;;  %s5027_s26 = int_to_ptr.vmem [resolvable:$false] %s5026_s26 }
  0x37   : > { %s5028_s4 = scalar_lea.vmem %s5027_s26, 32  ;;  %p5029_p7 = scmp.lt.s32.totalorder %s5474_s14, %s5027_s26 }
  0x38   : > { %p5024_p4 = pnand %p5022_p3, %p5486_p8  ;;  %p5030_p9 = scmp.lt.s32.totalorder %s5028_s4, %s5021_s29 }
  0x3a   : > { %p5025_p5 = pneg %p5024_p4  ;;  %p5031_p11 = por %p5030_p9, %p5029_p7 }
  0x3c   : > { %p5032_p12 = pnand %p5031_p11, %p5025_p5 }
  0x3e   : > { %5035 = shalt.err (!%p5032_p12)
}
  0x3f   : > { %4720 = dma.hbm_to_vmem [thread:$0]  (!%p5470_p6), %s5467_s15, 16, %s5474_s14, %s6389_s16  }
  0x40   : > { %s4689_s10 = smul.u32 192, %s5458_s28  ;;  %s6425_s3 = sld [smem:[#allocation29_spill]] }
  0x41   : > { %s4690_s17 = smul.u32 3072, %s5302_s22  ;;  %s4293_s4 = sshll.u32 %s5458_s28, 8 }
  0x42   : > { %s532_s12 = scalar_lea.vmem [#allocation9], %s4689_s10  ;;  %s6391_s1 = scalar_lea.sflag [#allocation10], %s5455_s27 }
  0x43   : > { %s539_s26 = sshll.u32 %s532_s12, 4  ;;  %s5518_s26 = int_to_ptr.vmem [resolvable:$true] %s539_s26 }
  0x46   : > { %s5516_s29 = scalar_lea.hbm %s6425_s3, %s4690_s17  ;;  %s5041_s17 = scalar_lea.hbm %s6425_s3, 6144 }
  0x47   : > { %s5036_s8 = scalar_lea.hbm %s5516_s29, 3072  ;;  %p5042_p1 = scmp.lt.u32.totalorder %s5516_s29, %s6425_s3 }
  0x48   : > { %p5037_p10 = scmp.ne.s32.totalorder %s5516_s29, %s5036_s8  ;;  %p5043_p2 = scmp.lt.u32.totalorder %s5041_s17, %s5036_s8 }
  0x49   : > { %p5045_p4 = scmp.lt.u32.totalorder %s5036_s8, %s5516_s29 }
  0x4a   : > { %p5039_p13 = pnand %p5037_p10, %p5486_p8  ;;  %p5044_p3 = por %p5043_p2, %p5042_p1 }
  0x4c   : > { %p5040_p0 = pneg %p5039_p13  ;;  %p5046_p5 = por %p5045_p4, %p5044_p3 }
  0x4e   : > { %p5047_p7 = pnand %p5046_p5, %p5040_p0 }
  0x50   : > { %5050 = shalt.err (!%p5047_p7)
}
  0x51   : > { %s5051_s10 = scalar_lea.vmem %s5518_s26, 3072  ;;  %s5309_s12 = smov [#allocation9]  }
  0x52   : > { %p5052_p9 = scmp.ne.s32.totalorder %s5518_s26, %s5051_s10  ;;  %s5056_s14 = sshll.u32 %s5309_s12, 4  ;;  %s5057_s14 = int_to_ptr.vmem [resolvable:$false] %s5056_s14 }
  0x53   : > { %s5058_s15 = scalar_lea.vmem %s5057_s14, 6144  ;;  %p5059_p10 = scmp.lt.s32.totalorder %s5518_s26, %s5057_s14 }
  0x54   : > { %p5054_p11 = pnand %p5052_p9, %p5486_p8  ;;  %p5060_p13 = scmp.lt.s32.totalorder %s5058_s15, %s5051_s10 }
  0x56   : > { %p5055_p12 = pneg %p5054_p11  ;;  %p5061_p1 = por %p5060_p13, %p5059_p10 }
  0x58   : > { %p5062_p2 = pnand %p5061_p1, %p5055_p12 }
  0x5a   : > { %5065 = shalt.err (!%p5062_p2)
}
  0x5b   : > { %s5310_s8 = smov 192   ;;  %s5311_s17 = smov 12  }
  0x5c   : > { %4726 = dma.hbm_to_vmem [thread:$0]  (!%p5470_p6), %s5516_s29, 3072, %s5518_s26, %s6391_s1, %s5310_s8, %s5310_s8, %s5311_s17  }
  0x5d   : > { %s4450_s24 = sshll.u32 %s5302_s22, 12  ;;  %s6426_s9 = sld [smem:[#allocation34_spill]] }
  0x5e   : > { %s599_s14 = scalar_lea.vmem [#allocation12], %s4293_s4  ;;  %s6390_s16 = scalar_lea.sflag [#allocation13], %s5455_s27 }
  0x5f   : > { %s606_s15 = sshll.u32 %s599_s14, 4  ;;  %s5555_s15 = int_to_ptr.vmem [resolvable:$true] %s606_s15 }
  0x63   : > { %s5551_s12 = scalar_lea.hbm %s6426_s9, %s4450_s24  ;;  %s5071_s8 = scalar_lea.hbm %s6426_s9, 8192 }
  0x64   : > { %s5066_s3 = scalar_lea.hbm %s5551_s12, 4096  ;;  %p5072_p5 = scmp.lt.u32.totalorder %s5551_s12, %s6426_s9 }
  0x65   : > { %p5067_p0 = scmp.ne.s32.totalorder %s5551_s12, %s5066_s3  ;;  %p5073_p7 = scmp.lt.u32.totalorder %s5071_s8, %s5066_s3 }
  0x66   : > { %p5075_p11 = scmp.lt.u32.totalorder %s5066_s3, %s5551_s12 }
  0x67   : > { %p5069_p3 = pnand %p5067_p0, %p5486_p8  ;;  %p5074_p9 = por %p5073_p7, %p5072_p5 }
  0x69   : > { %p5070_p4 = pneg %p5069_p3  ;;  %p5076_p12 = por %p5075_p11, %p5074_p9 }
  0x6b   : > { %p5077_p10 = pnand %p5076_p12, %p5070_p4 }
  0x6d   : > { %5080 = shalt.err (!%p5077_p10)
}
  0x6e   : > { %s5081_s10 = scalar_lea.vmem %s5555_s15, 4096  ;;  %s5312_s14 = smov [#allocation12]  }
  0x6f   : > { %p5082_p13 = scmp.ne.s32.totalorder %s5555_s15, %s5081_s10  ;;  %s5086_s29 = sshll.u32 %s5312_s14, 4  ;;  %s5087_s29 = int_to_ptr.vmem [resolvable:$false] %s5086_s29 }
  0x70   : > { %s5088_s26 = scalar_lea.vmem %s5087_s29, 8192  ;;  %p5089_p0 = scmp.lt.s32.totalorder %s5555_s15, %s5087_s29 }
  0x71   : > { %p5084_p1 = pnand %p5082_p13, %p5486_p8  ;;  %p5090_p3 = scmp.lt.s32.totalorder %s5088_s26, %s5081_s10 }
  0x73   : > { %p5085_p2 = pneg %p5084_p1  ;;  %p5091_p5 = por %p5090_p3, %p5089_p0 }
  0x75   : > { %p5092_p7 = pnand %p5091_p5, %p5085_p2 }
  0x77   : > { %5095 = shalt.err (!%p5092_p7)
}
  0x78   : > { %s5313_s3 = smov 256   ;;  %s5314_s8 = smov 16  }
  0x79   : > { %4732 = dma.hbm_to_vmem [thread:$0]  (!%p5470_p6), %s5551_s12, 4096, %s5555_s15, %s6390_s16, %s5313_s3, %s5313_s3, %s5314_s8  }
  0x7a   : > { %s6427_s11 = sld [smem:[#allocation36_spill]]  ;;  %s627_s14 = scalar_lea.vmem [#allocation14], %s4293_s4 }
  0x7b   : > { %s634_s29 = sshll.u32 %s627_s14, 4  ;;  %s5593_s26 = sadd.s32 4294967295, %s5306_s23   ;;  %s5590_s29 = int_to_ptr.vmem [resolvable:$true] %s634_s29 }
  0x7c   : > { %p94_p4 = scmp.ne.s32.totalorder %s5290_s19, %s5286_s18  ;;  %p6393_p9 = scmp.eq.s32.totalorder %s5593_s26, 0 }
  0x7d   : > { %p4284_p11 = scmp.ge.s32.totalorder %s5306_s23, 1  ;;  %p459_p12 = scmp.lt.s32.totalorder %s5306_s23, 3 }
  0x7e   : > { %p5602_p10 = por %p6393_p9, %p94_p4  ;;  %s5315_s12 = smov [#allocation3]  }
  0x7f   : > { %p5606_p13 = pnand %p4284_p11, %p459_p12  ;;  %s474_s15 = sshll.u32 %s5315_s12, 4  ;;  %s475_s15 = int_to_ptr.vmem [resolvable:$true] %s474_s15 }
  0x80   : > { %s5586_s10 = scalar_lea.hbm %s6427_s11, %s4450_s24  ;;  %s514_s3 = scalar_lea.vmem [#allocation8], %s5458_s28 }
  0x81   : > { %s6428_s24 = scalar_select %p5602_p10, 1, 0 }
  0x82   : > { %s6429_s4 = scalar_select %p5606_p13, 1, 0 }
  0x83   : > { %p4713_p1 = pneg %p5606_p13  ;;  %s521_s8 = sshll.u32 %s514_s3, 4  ;;  %s5619_s8 = int_to_ptr.vmem [resolvable:$true] %s521_s8 }
  0x84   : > { %s6431_s0 = sld [smem:[#allocation26_spill]] }
  0x85   : > { %p5614_p2 = pnand %p4713_p1, %p6393_p9 }
  0x87   : > { %p5098_p3 = pneg %p5614_p2 }
  0x8a   : > { %s5096_s16 = scalar_lea.hbm %s6431_s0, 256 }
  0x8b   : > { %p5097_p0 = scmp.ne.s32.totalorder %s6431_s0, %s5096_s16  ;;  %p5103_p4 = scmp.lt.u32.totalorder %s5096_s16, %s6431_s0 }
  0x8d   : > { %p5099_p5 = pnand %p5098_p3, %p5097_p0 }
  0x8f   : > { %p5100_p7 = pneg %p5099_p5 }
  0x91   : > { %p5105_p11 = pnand %p5103_p4, %p5100_p7 }
  0x93   : > { %5108 = shalt.err (!%p5105_p11)
}
  0x94   : > { %s5109_s3 = scalar_lea.vmem %s475_s15, 256  ;;  %p5117_p10 = scmp.lt.s32.totalorder %s475_s15, %s475_s15 }
  0x95   : > { %p5110_p12 = scmp.ne.s32.totalorder %s475_s15, %s5109_s3  ;;  %p5118_p13 = scmp.lt.s32.totalorder %s5109_s3, %s5109_s3 }
  0x97   : > { %p5112_p1 = pnand %p5110_p12, %p5098_p3  ;;  %p5119_p6 = por %p5118_p13, %p5117_p10 }
  0x99   : > { %p5113_p9 = pneg %p5112_p1 }
  0x9b   : > { %p5120_p8 = pnand %p5119_p6, %p5113_p9 }
  0x9d   : > { %5123 = shalt.err (!%p5120_p8)
}
  0x9e   : > { %s5316_s1 = smov 128   ;;  %s5317_s9 = smov 8  }
  0x9f   : > { %4716 = dma.hbm_to_vmem [thread:$0]  (!%p5614_p2), %s6431_s0, 256, %s475_s15, [#allocation4], %s5316_s1, %s5316_s1, %s5317_s9  }
  0xa0   : > { %s5124_s25 = scalar_lea.hbm %s5479_s30, 16  ;;  %p6432_p3 = scmp.ne.s32.totalorder %s6424_s20, 0 }
  0xa1   : > { %p5125_p0 = scmp.ne.s32.totalorder %s5479_s30, %s5124_s25  ;;  %s5129_s3 = scalar_lea.hbm %s6423_s2, 32 }
  0xa2   : > { %p5130_p6 = scmp.lt.u32.totalorder %s5479_s30, %s6423_s2  ;;  %p5131_p8 = scmp.lt.u32.totalorder %s5129_s3, %s5124_s25 }
  0xa3   : > { %p5127_p5 = pnand %p5125_p0, %p6432_p3  ;;  %p5133_p13 = scmp.lt.u32.totalorder %s5124_s25, %s5479_s30 }
  0xa4   : > { %p5132_p9 = por %p5131_p8, %p5130_p6 }
  0xa5   : > { %p5128_p10 = pneg %p5127_p5 }
  0xa6   : > { %p5134_p7 = por %p5133_p13, %p5132_p9 }
  0xa8   : > { %p5135_p4 = pnand %p5134_p7, %p5128_p10 }
  0xaa   : > { %5138 = shalt.err (!%p5135_p4)
}
  0xab   : > { %s5139_s15 = scalar_lea.vmem %s5619_s8, 16  ;;  %s5318_s18 = smov [#allocation8]  }
  0xac   : > { %p5140_p2 = scmp.ne.s32.totalorder %s5619_s8, %s5139_s15  ;;  %s5144_s1 = sshll.u32 %s5318_s18, 4  ;;  %s5145_s1 = int_to_ptr.vmem [resolvable:$false] %s5144_s1 }
  0xad   : > { %s5146_s7 = scalar_lea.vmem %s5145_s1, 32  ;;  %p5147_p1 = scmp.lt.s32.totalorder %s5619_s8, %s5145_s1 }
  0xae   : > { %p5142_p11 = pnand %p5140_p2, %p6432_p3  ;;  %p5148_p0 = scmp.lt.s32.totalorder %s5146_s7, %s5139_s15 }
  0xb0   : > { %p5143_p12 = pneg %p5142_p11  ;;  %p5149_p5 = por %p5148_p0, %p5147_p1 }
  0xb2   : > { %p5150_p6 = pnand %p5149_p5, %p5143_p12 }
  0xb4   : > { %5153 = shalt.err (!%p5150_p6)
}
  0xb5   : > { %p6433_p10 = scmp.ne.s32.totalorder %s6422_s13, 0  ;;  %s6434_s17 = scalar_lea.sflag [#allocation7], %s5455_s27 }
  0xb6   : > { %s4449_s9 = sshll.u32 %s5302_s22, 10  ;;  %s6435_s23 = sshll.u32 %s5458_s28, 6 }
  0xb7   : > { %4723 = dma.hbm_to_vmem [thread:$0]  (!%p6433_p10), %s5479_s30, 16, %s5619_s8, %s6434_s17  }
  0xb8   : > { %s560_s16 = scalar_lea.vmem [#allocation11], %s6435_s23  ;;  %s6436_s5 = sld [smem:[#allocation31_spill]] }
  0xb9   : > { %s567_s25 = sshll.u32 %s560_s16, 4  ;;  %s5669_s25 = int_to_ptr.vmem [resolvable:$true] %s567_s25 }
  0xbe   : > { %s5667_s3 = scalar_lea.hbm %s6436_s5, %s4449_s9  ;;  %s5159_s8 = scalar_lea.hbm %s6436_s5, 2048 }
  0xbf   : > { %s5154_s15 = scalar_lea.hbm %s5667_s3, 1024  ;;  %p5160_p7 = scmp.lt.u32.totalorder %s5667_s3, %s6436_s5 }
  0xc0   : > { %p5155_p8 = scmp.ne.s32.totalorder %s5667_s3, %s5154_s15  ;;  %p5161_p4 = scmp.lt.u32.totalorder %s5159_s8, %s5154_s15 }
  0xc1   : > { %p5163_p11 = scmp.lt.u32.totalorder %s5154_s15, %s5667_s3 }
  0xc2   : > { %p5157_p9 = pnand %p5155_p8, %p6432_p3  ;;  %p5162_p2 = por %p5161_p4, %p5160_p7 }
  0xc4   : > { %p5158_p13 = pneg %p5157_p9  ;;  %p5164_p12 = por %p5163_p11, %p5162_p2 }
  0xc6   : > { %p5165_p1 = pnand %p5164_p12, %p5158_p13 }
  0xc8   : > { %5168 = shalt.err (!%p5165_p1)
}
  0xc9   : > { %s5169_s7 = scalar_lea.vmem %s5669_s25, 1024  ;;  %s5319_s17 = smov [#allocation11]  }
  0xca   : > { %p5170_p0 = scmp.ne.s32.totalorder %s5669_s25, %s5169_s7  ;;  %s5174_s9 = sshll.u32 %s5319_s17, 4  ;;  %s5175_s9 = int_to_ptr.vmem [resolvable:$false] %s5174_s9 }
  0xcb   : > { %s5176_s23 = scalar_lea.vmem %s5175_s9, 2048  ;;  %p5177_p8 = scmp.lt.s32.totalorder %s5669_s25, %s5175_s9 }
  0xcc   : > { %p5172_p5 = pnand %p5170_p0, %p6432_p3  ;;  %p5178_p9 = scmp.lt.s32.totalorder %s5176_s23, %s5169_s7 }
  0xce   : > { %p5173_p6 = pneg %p5172_p5  ;;  %p5179_p7 = por %p5178_p9, %p5177_p8 }
  0xd0   : > { %p5180_p4 = pnand %p5179_p7, %p5173_p6 }
  0xd2   : > { %5183 = shalt.err (!%p5180_p4)
}
  0xd3   : > { %s5320_s16 = smov 64   ;;  %s5321_s14 = smov 4  }
  0xd4   : > { %s6437_s12 = scalar_lea.sflag [#allocation10], %s5455_s27  ;;  %s5184_s15 = scalar_lea.hbm %s5586_s10, 4096 }
  0xd5   : > { %4729 = dma.hbm_to_vmem [thread:$0]  (!%p6433_p10), %s5667_s3, 1024, %s5669_s25, %s6437_s12, %s5320_s16, %s5320_s16, %s5321_s14  }
  0xd6   : > { %p5185_p13 = scmp.ne.s32.totalorder %s5586_s10, %s5184_s15  ;;  %s5189_s8 = scalar_lea.hbm %s6427_s11, 8192 }
  0xd7   : > { %p5190_p12 = scmp.lt.u32.totalorder %s5586_s10, %s6427_s11  ;;  %p5191_p1 = scmp.lt.u32.totalorder %s5189_s8, %s5184_s15 }
  0xd8   : > { %p5187_p2 = pnand %p5185_p13, %p6432_p3  ;;  %p5193_p5 = scmp.lt.u32.totalorder %s5184_s15, %s5586_s10 }
  0xd9   : > { %p5192_p0 = por %p5191_p1, %p5190_p12 }
  0xda   : > { %p5188_p11 = pneg %p5187_p2 }
  0xdb   : > { %p5194_p6 = por %p5193_p5, %p5192_p0 }
  0xdd   : > { %p5195_p8 = pnand %p5194_p6, %p5188_p11 }
  0xdf   : > { %5198 = shalt.err (!%p5195_p8)
}
  0xe0   : > { %s5199_s25 = scalar_lea.vmem %s5590_s29, 4096  ;;  %s5322_s3 = smov [#allocation14]  }
  0xe1   : > { %p5200_p9 = scmp.ne.s32.totalorder %s5590_s29, %s5199_s25  ;;  %s5204_s7 = sshll.u32 %s5322_s3, 4  ;;  %s5205_s7 = int_to_ptr.vmem [resolvable:$false] %s5204_s7 }
  0xe2   : > { %s5206_s17 = scalar_lea.vmem %s5205_s7, 8192  ;;  %p5207_p13 = scmp.lt.s32.totalorder %s5590_s29, %s5205_s7 }
  0xe3   : > { %p5202_p7 = pnand %p5200_p9, %p6432_p3  ;;  %p5208_p2 = scmp.lt.s32.totalorder %s5206_s17, %s5199_s25 }
  0xe5   : > { %p5203_p4 = pneg %p5202_p7  ;;  %p5209_p12 = por %p5208_p2, %p5207_p13 }
  0xe7   : > { %p5210_p1 = pnand %p5209_p12, %p5203_p4 }
  0xe9   : > { %5213 = shalt.err (!%p5210_p1)
}
  0xea   : > { %s6438_s9 = scalar_lea.sflag [#allocation13], %s5455_s27  ;;  %p6439_p3 = scmp.ne.s32.totalorder %s6429_s4, 0 }
  0xeb   : > { %4735 = dma.hbm_to_vmem [thread:$0]  (!%p6433_p10), %s5586_s10, 4096, %s5590_s29, %s6438_s9, %s5320_s16, %s5320_s16, %s5321_s14  }
  0xec   : > { %652 = sbr.rel (%p6439_p3) target bundleno = 3269 (0xcc5), region = 80  ;;  %p6440_p11 = scmp.eq.s32.totalorder (!%p6439_p3), %s5593_s26, 0 }
  0xf3   : > { %5265 = dma.done.wait (%p6440_p11), [#allocation4], 256   ;;  %p6441_p0 = pmov %p6440_p11 }
  0xf4   : > { %s658_s13 = sand.u32 1, %s5593_s26   ;;  %s5731_s20 = sand.u32 1, %s5290_s19  }
  0xf5   : > { %5267 = vsyncadd (%p6441_p0), [#allocation4], 4294967040  ;;  %s659_s27 = scalar_lea.sflag [#allocation7], %s658_s13  ;;  %p6442_p5 = scmp.ne.s32.totalorder %s6428_s24, 0 }
  0xf7   : > { %5269 = dma.done.wait (%p6442_p5), %s659_s27, 32  }
  0xf8   : > { %5271 = vsyncadd (%p6442_p5), %s659_s27, 4294967264  ;;  %s4691_s10 = smul.u32 192, %s5731_s20  ;;  %s675_s4 = scalar_lea.sflag [#allocation10], %s658_s13 }
  0xfa   : > { %s5740_s16 = scalar_lea.vmem [#allocation9], %s4691_s10 }
  0xfb   : > { %5273 = dma.done.wait (%p6442_p5), %s675_s4, 4096  }
  0xfc   : > { %5275 = vsyncadd (%p6442_p5), %s675_s4, 4294963200  ;;  %s4301_s14 = sshll.u32 %s5731_s20, 6  ;;  %s4302_s12 = sshll.u32 %s5731_s20, 8 }
  0xfd   : > { %s5748_s15 = scalar_lea.vmem [#allocation11], %s4301_s14  ;;  %s693_s30 = scalar_lea.sflag [#allocation13], %s658_s13 }
  0xfe   : > { %s5750_s28 = scalar_lea.vmem [#allocation12], %s4302_s12 }
  0xff   : > { %5277 = dma.done.wait (%p6442_p5), %s693_s30, 8192  }
 0x100   : > { %5279 = vsyncadd (%p6442_p5), %s693_s30, 4294959104  ;;  %p791_p10 = scmp.lt.s32.totalorder %s5298_s21, 1  ;;  %s6443_s24 = sld [smem:[#allocation32_spill]] }
 0x101   : > { %s6444_s10 = sld [smem:[#allocation33_spill]]  ;;  %s6445_s29 = sld [smem:[#allocation30_spill]] }
 0x102   : > { %s5758_s8 = scalar_select %p791_p10, %s5298_s21, 1 }
 0x103   : > { %s6446_s11 = sld [smem:[#allocation35_spill]]  ;;  %s6447_s3 = sld [smem:[#allocation37_spill]] }
 0x104   : > { %s4692_s18 = smul.u32 3, %s5758_s8  ;;  %s4304_s0 = sshll.u32 %s5758_s8, 2 }
 0x105   : > { %s5788_s17 = scalar_lea.vmem [#allocation14], %s4302_s12  ;;  %p4305_p6 = scmp.ne.s32.totalorder %s5298_s21, 0 }
 0x106   : > { %s800_s9 = scalar_lea.vmem %s6443_s24, %s5758_s8  ;;  %v817_v0 = vld [vmem:[#allocation3] sm:$0xff] (!%p4305_p6)  ;;  %v818_v1 = vld [vmem:[#allocation3 + $0x8] sm:$0xff] (!%p4305_p6) }
 0x107   : > { %s803_s4 = scalar_lea.vmem %s6444_s10, %s5758_s8  ;;  %s5776_s23 = scalar_lea.vmem %s6445_s29, %s4692_s18  ;;  %819 = vst [vmem:[#allocation2] sm:$0xff] (!%p4305_p6), %v817_v0  ;;  %820 = vst [vmem:[#allocation2 + $0x8] sm:$0xff] (!%p4305_p6), %v818_v1 }
 0x108   : > { %816 = sbr.rel (%p4305_p6) target bundleno = 271 (0x10f), region = 112 }
 0x109   : > { %s5782_s22 = scalar_lea.vmem %s6446_s11, %s4304_s0  ;;  %s810_s7 = scalar_lea.vmem %s6447_s3, %s5758_s8 }
 0x10f PF: > { %v821_v2 = vld [vmem:[#allocation2] sm:$0xff]  ;;  %v822_v3 = vld [vmem:[#allocation2 + $0x8] sm:$0xff]  ;;  %v5323_v6 = vmov 0.0   ;;  %v4836_v22 = vld [vmem:[%s5740_s16 + $0x4c] ss:$12 sps:$4 sm:$0xff]   ;;  %v5324_v32 = vmov 0   ;;  %v823_v55 = vlaneseq }
 0x110   : > { %831 = vadd.xlane.f32.xlu0 %v821_v2  ;;  %v4824_v4 = vld [vmem:[%s5740_s16 + $0x4] ss:$12 sps:$4 sm:$0xff]   ;;  %v4826_v5 = vld [vmem:[%s5740_s16] ss:$12 sps:$4 sm:$0xff]   ;;  %4553 = vmatprep.subr.bf16.mxu1 %v5323_v6  ;;  %v4827_v7 = vld [vmem:[%s5740_s16 + $0x8] ss:$12 sps:$4 sm:$0xff]  }
 0x111   : > { %v4828_v8 = vld [vmem:[%s5740_s16 + $0x1c] ss:$12 sps:$4 sm:$0xff]   ;;  %1048 = vmatprep.subr.bf16.mxu0 %v4824_v4  ;;  %4554 = vmatpush3.bf16.msra.mxu1 %v4827_v7  ;;  %v4830_v17 = vld [vmem:[%s5740_s16 + $0x18] ss:$12 sps:$4 sm:$0xff]   ;;  %v4831_v18 = vld [vmem:[%s5740_s16 + $0x20] ss:$12 sps:$4 sm:$0xff]  }
 0x112   : > { %1049 = vmatpush1.bf16.msra.mxu0 %v4826_v5  ;;  %4555 = vmatprep.subr.bf16.mxu1 %v5323_v6  ;;  %v4832_v19 = vld [vmem:[%s5740_s16 + $0x34] ss:$12 sps:$4 sm:$0xff]   ;;  %v4834_v20 = vld [vmem:[%s5740_s16 + $0x30] ss:$12 sps:$4 sm:$0xff]   ;;  %v4835_v21 = vld [vmem:[%s5740_s16 + $0x38] ss:$12 sps:$4 sm:$0xff]  }
 0x113   : > { %1050 = vmatprep.subr.bf16.mxu0 %v4828_v8  ;;  %v4838_v23 = vld [vmem:[%s5740_s16 + $0x48] ss:$12 sps:$4 sm:$0xff]   ;;  %v4839_v24 = vld [vmem:[%s5740_s16 + $0x50] ss:$12 sps:$4 sm:$0xff]   ;;  %v4842_v26 = vld [vmem:[%s5740_s16 + $0x60] ss:$12 sps:$4 sm:$0xff]   ;;  %1080 = vmatprep.mubr.bf16.mxu0 %v5324_v32 }
 0x114   : > { %833 = vadd.xlane.f32.xlu0 %v822_v3  ;;  %v4840_v25 = vld [vmem:[%s5740_s16 + $0x64] ss:$12 sps:$4 sm:$0xff]   ;;  %v4843_v27 = vld [vmem:[%s5740_s16 + $0x68] ss:$12 sps:$4 sm:$0xff]   ;;  %v4847_v30 = vld [vmem:[%s5740_s16 + $0x80] ss:$12 sps:$4 sm:$0xff]  }
 0x115   : > { %4556 = vmatpush3.bf16.msra.mxu1 %v4831_v18  ;;  %v4844_v28 = vld [vmem:[%s5740_s16 + $0x7c] ss:$12 sps:$4 sm:$0xff]   ;;  %v4846_v29 = vld [vmem:[%s5740_s16 + $0x78] ss:$12 sps:$4 sm:$0xff]   ;;  %v4848_v31 = vld [vmem:[%s5740_s16 + $0x94] ss:$12 sps:$4 sm:$0xff]  }
 0x116   : > { %1051 = vmatpush1.bf16.msra.mxu0 %v4830_v17  ;;  %4557 = vmatprep.subr.bf16.mxu1 %v5323_v6  ;;  %vm5325_vm0 = vmmov 0   ;;  %v4850_v33 = vld [vmem:[%s5740_s16 + $0x90] ss:$12 sps:$4 sm:$0xff]   ;;  %v4851_v34 = vld [vmem:[%s5740_s16 + $0x98] ss:$12 sps:$4 sm:$0xff]   ;;  %s6448_s0 = scalar_lea.vmem [#allocation6], %s5731_s20 }
 0x117   : > { %1052 = vmatprep.subr.bf16.mxu0 %v4832_v19  ;;  %4569 = vmatprep.mubr.msk.bf16.mxu1 %vm5325_vm0, %v5323_v6  ;;  %v4852_v35 = vld [vmem:[%s5740_s16 + $0xac] ss:$12 sps:$4 sm:$0xff]   ;;  %v4854_v36 = vld [vmem:[%s5740_s16 + $0xa8] ss:$12 sps:$4 sm:$0xff]   ;;  %v4855_v37 = vld [vmem:[%s5740_s16 + $0xb0] ss:$12 sps:$4 sm:$0xff]   ;;  %s6450_s16 = scalar_lea.vmem %s6376_s6, %s5758_s8 }
 0x118   : > { %v4306_v46 = vld [vmem:[%s6448_s0] ss:$0 sm:$0xff]  ;;  %s6449_s2 = scalar_lea.vmem [#allocation8], %s5731_s20  ;;  %v5847_v56 = vshrl.u32 %v823_v55, 7  ;;  %s5326_s5 = smov 64   ;;  %vm1978_vm1 = vcmask 261120  }
 0x119   : > { %4558 = vmatpush3.bf16.msra.mxu1 %v4835_v21  ;;  %v4307_v50 = vld [vmem:[%s6449_s2] ss:$0 sm:$0xff]  ;;  %s5327_s11 = smov 96   ;;  %s5328_s20 = smov 32   ;;  %v5329_v18 = vmov 1983009808  }
 0x11a   : > { %1053 = vmatpush1.bf16.msra.mxu0 %v4834_v20  ;;  %4559 = vmatprep.subr.bf16.mxu1 %v5323_v6  ;;  %v907_v57 = vsub.s32 0, %v5847_v56  ;;  %v915_v58 = vsub.s32 2, %v5847_v56  ;;  %v903_v59 = vld [vmem:[%s5776_s23] sm:$0x7]  ;;  %v911_v60 = vsub.s32 1, %v5847_v56  ;;  %v1166_v19 = vunpack.c.l.s4 %v5329_v18  ;;  %p4440_p8 = scmp.ne.s32.totalorder %s5298_s21, 1 }
 0x11b   : > { %1054 = vmatprep.subr.bf16.mxu0 %v4836_v22  ;;  %v5330_v21 = vmov 1934713408   ;;  %vm2363_vm3 = vcmask 64512   ;;  %vm2463_vm4 = vcmask 1043456   ;;  %vm3127_vm5 = vcmask 523264   ;;  %s6454_s27 = sld [smem:[#allocation38_spill]] (!%p4440_p8) }
 0x11c   : > { %v908_v61 = vrot.slane %v903_v59, %v907_v57  ;;  %v916_v62 = vrot.slane %v903_v59, %v915_v58  ;;  %v912_v1 = vrot.slane %v903_v59, %v911_v60  ;;  %v1167_v20 = vunpack.c.0.s8 %v1166_v19  ;;  %s6455_s14 = sld [smem:[#allocation39_spill]] (!%p4440_p8) }
 0x11d   : > { %4560 = vmatpush3.bf16.msra.mxu1 %v4839_v24  ;;  %v1197_v22 = vunpack.c.l.s4 %v5330_v21  ;;  %v5869_v24 = vpack.i.b16 %v5324_v32, %v5324_v32  ;;  %vm3130_vm6 = vcmask 785408  }
 0x11e   : > { %1055 = vmatpush1.bf16.msra.mxu0 %v4838_v23  ;;  %4561 = vmatprep.subr.bf16.mxu1 %v5323_v6 }
 0x11f   : > { %1056 = vmatprep.subr.bf16.mxu0 %v4840_v25 }
 0x121   : > { %4562 = vmatpush3.bf16.msra.mxu1 %v4843_v27 }
 0x122   : > { %1057 = vmatpush1.bf16.msra.mxu0 %v4842_v26  ;;  %4563 = vmatprep.subr.bf16.mxu1 %v5323_v6 }
 0x123   : > { %1058 = vmatprep.subr.bf16.mxu0 %v4844_v28 }
 0x125   : > { %4564 = vmatpush3.bf16.msra.mxu1 %v4847_v30  ;;  %v1198_v30 = vunpack.c.0.s8 %v1197_v22 }
 0x126   : > { %1059 = vmatpush1.bf16.msra.mxu0 %v4846_v29  ;;  %4565 = vmatprep.subr.bf16.mxu1 %v5323_v6  ;;  %v5872_v29 = vsub.s32 %v1167_v20, %v5847_v56 }
 0x127   : > { %1060 = vmatprep.subr.bf16.mxu0 %v4848_v31 }
 0x129   : > { %4566 = vmatpush3.bf16.msra.mxu1 %v4851_v34 }
 0x12a   : > { %1061 = vmatpush1.bf16.msra.mxu0 %v4850_v33  ;;  %4567 = vmatprep.subr.bf16.mxu1 %v5323_v6 }
 0x12b   : > { %1062 = vmatprep.subr.bf16.mxu0 %v4852_v35 }
 0x12d   : > { %4568 = vmatpush3.bf16.msra.mxu1 %v4855_v37 }
 0x12e   : > { %1063 = vmatpush1.bf16.msra.mxu0 %v4854_v36  ;;  %4573 = vmatprep.subr.bf16.mxu1 %v5323_v6 }
 0x12f   : > { %4597 = vmatprep.subr.bf16.mxu0 %v5323_v6 }
 0x19d   : > { %v832_v9 = vpop.xlane.xlu0 %831 }
 0x19e   : > { %v836_v10 = vmul.f32 0.0078125, %v832_v9 }
 0x1a0   : > { %v5797_v11 = vsub.f32 %v821_v2, %v836_v10 }
 0x1a1   : > { %v834_v12 = vpop.xlane.xlu0 %833 }
 0x1a2   : > { %v837_v13 = vmul.f32 0.0078125, %v834_v12  ;;  %v840_v14 = vmul.f32 %v5797_v11, %v5797_v11 }
 0x1a4   : > { %v5801_v15 = vsub.f32 %v822_v3, %v837_v13  ;;  %842 = vadd.xlane.f32.xlu1 %v840_v14 }
 0x1a6   : > { %v841_v16 = vmul.f32 %v5801_v15, %v5801_v15 }
 0x1a8   : > { %844 = vadd.xlane.f32.xlu1 %v841_v16 }
 0x231   : > { %v843_v38 = vpop.xlane.xlu1 %842 }
 0x232   : > { %v846_v39 = vmul.f32 0.0078125, %v843_v38 }
 0x234   : > { %v848_v40 = vadd.f32 1e-05, %v846_v39  ;;  %v5877_v39 = vsub.s32 %v1198_v30, %v5847_v56 }
 0x235   : > { %v845_v41 = vpop.xlane.xlu1 %844 }
 0x236   : > { %4944 = vrsqrt.f32 %v848_v40  ;;  %v847_v42 = vmul.f32 0.0078125, %v845_v41 }
 0x238   : > { %v849_v43 = vadd.f32 1e-05, %v847_v42 }
 0x23a   : > { %4946 = vrsqrt.f32 %v849_v43 }
 0x240   : > { %v4945_v44 = vpop.eup %4944 }
 0x241   : > { %v852_v45 = vmul.f32 %v4945_v44, %v5797_v11 }
 0x243   : > { %v860_v49 = vmul.f32 %v4306_v46, %v852_v45 }
 0x244   : > { %v4947_v47 = vpop.eup %4946 }
 0x245   : > { %v853_v48 = vmul.f32 %v4947_v47, %v5801_v15  ;;  %v868_v52 = vadd.f32 %v4307_v50, %v860_v49 }
 0x247   : > { %v861_v51 = vmul.f32 %v4306_v46, %v853_v48 }
 0x249   : > { %v869_v53 = vadd.f32 %v4307_v50, %v861_v51 }
 0x24b   : > { %v870_v54 = vpack.c.bf16 %v869_v53, %v868_v52 }
 0x24d   : > { %1081 = vmatmul.mubr.bf16.vlgmr.msra.gmra.mrb[0].mxu0 %v870_v54  ;;  %4570 = vmatmul.mubr.bf16.vlgmr.msra.gmra.mrb[0].mxu1 %v870_v54 }
 0x24e   : > { %4575 = vmatprep.mubr.msk.bf16.mxu1 %vm5325_vm0, %v5323_v6  ;;  %4599 = vmatprep.mubr.msk.bf16.mxu0 %vm5325_vm0, %v5323_v6 }
 0x320   : > { %v1082_v63 = vpop.f32.mrb[0].mxu0  ;;  %v1125_v0 = vpop.f32.mrb[0].mxu1 }
 0x321   : > { %v1084_v2 = vpop.f32.mrb[1].mxu0  ;;  %v4571_v3 = vpop.f32.mrb[1].mxu1  ;;  %v1083_v7 = vadd.f32 %v1082_v63, %v908_v61  ;;  %v1126_v8 = vadd.f32 %v1125_v0, %v916_v62 }
 0x322   : > { %v1086_v4 = vpop.f32.mrb[2].mxu0  ;;  %v1128_v5 = vpop.f32.mrb[2].mxu1  ;;  %v1085_v13 = vadd.f32 %v1084_v2, %v912_v1 }
 0x323   : > { %v1087_v9 = vadd.f32 %v1086_v4, %v908_v61  ;;  %v1129_v10 = vadd.f32 %v1128_v5, %v916_v62  ;;  %v1088_v11 = vpop.f32.mrb[3].mxu0  ;;  %v4572_v12 = vpop.f32.mrb[3].mxu1 }
 0x324   : > { %v1089_v14 = vadd.f32 %v1088_v11, %v912_v1 }
 0x325   : > { %v1132_v15 = vpack.c.bf16 %v1087_v9, %v1083_v7  ;;  %v5859_v16 = vpack.c.bf16 %v1129_v10, %v1126_v8 }
 0x326   : > { %v1133_v17 = vpack.c.bf16 %v1089_v14, %v1085_v13 }
 0x327   : > { %v1146_v47 = vshrl.u32 %v1132_v15, 16 }
 0x328   : > { %1423 = vrot.lane.b32.xlu1 %v1133_v17, %s5326_s5  ;;  %1421 = vrot.lane.b32.xlu0 %v1133_v17, %s5327_s11  ;;  %v1431_v27 = vshrl.u32 %v1133_v17, 16 }
 0x32c   : > { %1425 = vrot.lane.b32.xlu1 %v1133_v17, %s5328_s20  ;;  %1138 = vrot.lane.b32.xlu0 %v1132_v15, %s5326_s5 }
 0x330   : > { %1136 = vrot.lane.b32.xlu1 %v1132_v15, %s5327_s11 }
 0x334   : > { %1140 = vrot.lane.b32.xlu1 %v1132_v15, %s5328_s20 }
 0x39a   : > { %v1424_v23 = vpop.permute.xlu1 %1423  ;;  %v1422_v25 = vpop.permute.xlu0 %1421 }
 0x39b   : > { %v1429_v26 = vpack.i.b16 %v1422_v25, %v1133_v17  ;;  %v1432_v28 = vshrl.u32 %v1422_v25, 16  ;;  %v1439_v37 = vshrl.u32 %v1424_v23, 16 }
 0x39d   : > { %v1433_v31 = vpack.i.b16 %v1432_v28, %v1431_v27  ;;  %v1443_v33 = vcombine.high %v1429_v26, %v5869_v24  ;;  %v1450_v40 = vrot.slane %v1429_v26, %v5872_v29 }
 0x39e   : > { %v1426_v34 = vpop.permute.xlu1 %1425  ;;  %v1139_v19 = vpop.permute.xlu0 %1138 }
 0x39f   : > { %v1509_v35 = vcombine.high %v1433_v31, %v5869_v24  ;;  %v1437_v36 = vpack.i.b16 %v1426_v34, %v1424_v23  ;;  %v1440_v38 = vshrl.u32 %v1426_v34, 16  ;;  %v1457_v43 = vrot.slane %v1443_v33, %v5872_v29 }
 0x3a0   : > { %v1516_v44 = vrot.slane %v1433_v31, %v5872_v29  ;;  %v1154_v33 = vshrl.u32 %v1139_v19, 16 }
 0x3a1   : > { %v1458_v41 = vcombine.high %v1437_v36, %v5869_v24  ;;  %v1465_v42 = vrot.slane %v1437_v36, %v5872_v29  ;;  %v1441_v45 = vpack.i.b16 %v1440_v38, %v1439_v37  ;;  %v1523_v48 = vrot.slane %v1509_v35, %v5872_v29 }
 0x3a2   : > { %v1137_v46 = vpop.permute.xlu1 %1136 }
 0x3a3   : > { %v1472_v49 = vrot.slane %v1458_v41, %v5872_v29  ;;  %v1473_v50 = vcombine.low %v1450_v40, %v1465_v42  ;;  %v1474_v51 = vcombine.high %v1450_v40, %v1465_v42  ;;  %v1524_v52 = vcombine.high %v1441_v45, %v5869_v24 }
 0x3a4   : > { %v1531_v53 = vrot.slane %v1441_v45, %v5872_v29  ;;  %v1144_v54 = vpack.i.b16 %v1137_v46, %v1132_v15  ;;  %v1147_v59 = vshrl.u32 %v1137_v46, 16 }
 0x3a5   : > { %v1481_v61 = vrot.slane %v1473_v50, %v5877_v39  ;;  %v1488_v62 = vrot.slane %v1474_v51, %v5877_v39  ;;  %v1489_v63 = vcombine.low %v1457_v43, %v1472_v49  ;;  %v1490_v0 = vcombine.high %v1457_v43, %v1472_v49 }
 0x3a6   : > { %v1538_v1 = vrot.slane %v1524_v52, %v5872_v29  ;;  %v1539_v2 = vcombine.low %v1516_v44, %v1531_v53  ;;  %v1540_v3 = vcombine.high %v1516_v44, %v1531_v53  ;;  %v1148_v4 = vpack.i.b16 %v1147_v59, %v1146_v47  ;;  %v1141_v25 = vpop.permute.xlu1 %1140 }
 0x3a7   : > { %v1497_v5 = vrot.slane %v1489_v63, %v5877_v39  ;;  %v1504_v7 = vrot.slane %v1490_v0, %v5877_v39  ;;  %v1575_v8 = vcombine.low %v1481_v61, %v1488_v62  ;;  %v4336_v9 = vcombine.high %v1481_v61, %v1488_v62 }
 0x3a8   : > { %v1547_v10 = vrot.slane %v1539_v2, %v5877_v39  ;;  %v1554_v11 = vrot.slane %v1540_v3, %v5877_v39  ;;  %v1555_v12 = vcombine.low %v1523_v48, %v1538_v1  ;;  %v1556_v13 = vcombine.high %v1523_v48, %v1538_v1 }
 0x3a9   : > { %v1582_v14 = vrot.slane %v1575_v8, %v5872_v29  ;;  %v1590_v15 = vrot.slane %v4336_v9, %v5872_v29  ;;  %v1625_v17 = vcombine.low %v1497_v5, %v1504_v7  ;;  %v4338_v18 = vcombine.high %v1497_v5, %v1504_v7 }
 0x3aa   : > { %v1563_v20 = vrot.slane %v1555_v12, %v5877_v39  ;;  %v1570_v21 = vrot.slane %v1556_v13, %v5877_v39  ;;  %v1600_v22 = vcombine.low %v1547_v10, %v1554_v11  ;;  %v4337_v23 = vcombine.high %v1547_v10, %v1554_v11 }
 0x3ab   : > { %v5900_v26 = vrot.slane %v1625_v17, %v5872_v29  ;;  %v5903_v27 = vrot.slane %v4338_v18, %v5872_v29  ;;  %v1164_v28 = vcombine.high %v1144_v54, %v5869_v24  ;;  %v1171_v34 = vrot.slane %v1144_v54, %v5872_v29 }
 0x3ac   : > { %v1607_v30 = vrot.slane %v1600_v22, %v5872_v29  ;;  %v1615_v31 = vrot.slane %v4337_v23, %v5872_v29  ;;  %v1650_v35 = vcombine.low %v1563_v20, %v1570_v21  ;;  %v4339_v36 = vcombine.high %v1563_v20, %v1570_v21 }
 0x3ad   : > { %v1230_v37 = vcombine.high %v1148_v4, %v5869_v24  ;;  %v1152_v38 = vpack.i.b16 %v1141_v25, %v1139_v19  ;;  %v1178_v40 = vrot.slane %v1164_v28, %v5872_v29  ;;  %v1155_v41 = vshrl.u32 %v1141_v25, 16 }
 0x3ae   : > { %v1591_v42 = vcombine.low %v1582_v14, %v1590_v15  ;;  %v1616_v43 = vcombine.low %v1607_v30, %v1615_v31  ;;  %v1237_v44 = vrot.slane %v1148_v4, %v5872_v29  ;;  %v1641_v47 = vcombine.low %v5900_v26, %v5903_v27 }
 0x3af   : > { %v1179_v45 = vcombine.high %v1152_v38, %v5869_v24  ;;  %v1186_v46 = vrot.slane %v1152_v38, %v5872_v29  ;;  %v1244_v48 = vrot.slane %v1230_v37, %v5872_v29  ;;  %v1156_v49 = vpack.i.b16 %v1155_v41, %v1154_v33 }
 0x3b0   : > { %v5918_v50 = vrot.slane %v1591_v42, %v5877_v39  ;;  %v5921_v51 = vrot.slane %v1616_v43, %v5877_v39  ;;  %v1657_v59 = vrot.slane %v1650_v35, %v5872_v29  ;;  %v1665_v0 = vrot.slane %v4339_v36, %v5872_v29 }
 0x3b1   : > { %v1193_v52 = vrot.slane %v1179_v45, %v5872_v29  ;;  %v1194_v53 = vcombine.low %v1171_v34, %v1186_v46  ;;  %v1195_v54 = vcombine.high %v1171_v34, %v1186_v46  ;;  %v1245_v61 = vcombine.high %v1156_v49, %v5869_v24 }
 0x3b2   : > { %v1252_v62 = vrot.slane %v1156_v49, %v5872_v29  ;;  %v1677_v63 = vpack.i.b16 %v5921_v51, %v5918_v50  ;;  %v1666_v33 = vcombine.low %v1657_v59, %v1665_v0  ;;  %v5948_v38 = vrot.slane %v1641_v47, %v5877_v39 }
 0x3b3   : > { %v1202_v1 = vrot.slane %v1194_v53, %v5877_v39  ;;  %v1209_v2 = vrot.slane %v1195_v54, %v5877_v39  ;;  %v1210_v3 = vcombine.low %v1178_v40, %v1193_v52  ;;  %v1211_v4 = vcombine.high %v1178_v40, %v1193_v52 }
 0x3b4   : > { %v1259_v5 = vrot.slane %v1245_v61, %v5872_v29  ;;  %v1260_v7 = vcombine.low %v1237_v44, %v1252_v62  ;;  %v1261_v8 = vcombine.high %v1237_v44, %v1252_v62  ;;  %v1983_v9 = vsel %vm1978_vm1, %v1677_v63, 0 }
 0x3b5   : > { %v1218_v10 = vrot.slane %v1210_v3, %v5877_v39  ;;  %v1225_v11 = vrot.slane %v1211_v4, %v5877_v39  ;;  %v1296_v12 = vcombine.low %v1202_v1, %v1209_v2  ;;  %v4332_v13 = vcombine.high %v1202_v1, %v1209_v2  ;;  %4574 = vmatpush3.bf16.xpose.msra.mxu1 %v1983_v9 }
 0x3b6   : > { %v1268_v14 = vrot.slane %v1260_v7, %v5877_v39  ;;  %v1275_v15 = vrot.slane %v1261_v8, %v5877_v39  ;;  %v1276_v17 = vcombine.low %v1244_v48, %v1259_v5  ;;  %v1277_v18 = vcombine.high %v1244_v48, %v1259_v5  ;;  %4579 = vmatprep.subr.bf16.mxu1 %v5323_v6 }
 0x3b7   : > { %v1303_v19 = vrot.slane %v1296_v12, %v5872_v29  ;;  %v1311_v20 = vrot.slane %v4332_v13, %v5872_v29  ;;  %v1346_v21 = vcombine.low %v1218_v10, %v1225_v11  ;;  %v4334_v22 = vcombine.high %v1218_v10, %v1225_v11 }
 0x3b8   : > { %v1284_v23 = vrot.slane %v1276_v17, %v5877_v39  ;;  %v1291_v25 = vrot.slane %v1277_v18, %v5877_v39  ;;  %v1321_v26 = vcombine.low %v1268_v14, %v1275_v15  ;;  %v4333_v27 = vcombine.high %v1268_v14, %v1275_v15 }
 0x3b9   : > { %v1312_v28 = vcombine.low %v1303_v19, %v1311_v20  ;;  %v1353_v30 = vrot.slane %v1346_v21, %v5872_v29  ;;  %v1361_v31 = vrot.slane %v4334_v22, %v5872_v29  ;;  %v5951_v40 = vrot.slane %v1666_v33, %v5877_v39 }
 0x3ba   : > { %v1328_v34 = vrot.slane %v1321_v26, %v5872_v29  ;;  %v1336_v35 = vrot.slane %v4333_v27, %v5872_v29  ;;  %v1371_v36 = vcombine.low %v1284_v23, %v1291_v25  ;;  %v4335_v37 = vcombine.high %v1284_v23, %v1291_v25 }
 0x3bb   : > { %v1679_v41 = vshrl.u32 %v5921_v51, 16  ;;  %v1678_v45 = vshrl.u32 %v5918_v50, 16  ;;  %v1362_v46 = vcombine.low %v1353_v30, %v1361_v31  ;;  %v1689_v48 = vpack.i.b16 %v5951_v40, %v5948_v38 }
 0x3bc   : > { %v1337_v42 = vcombine.low %v1328_v34, %v1336_v35  ;;  %v1378_v43 = vrot.slane %v1371_v36, %v5872_v29  ;;  %v1386_v44 = vrot.slane %v4335_v37, %v5872_v29  ;;  %v1319_v49 = vrot.slane %v1312_v28, %v5877_v39 }
 0x3bd   : > { %v1680_v53 = vpack.i.b16 %v1679_v41, %v1678_v45  ;;  %v2167_v54 = vsel %vm1978_vm1, %v1689_v48, 0  ;;  %v1674_v59 = vcombine.high %v5951_v40, %v5324_v32  ;;  %v1369_v63 = vrot.slane %v1362_v46, %v5877_v39 }
 0x3be   : > { %v1387_v47 = vcombine.low %v1378_v43, %v1386_v44  ;;  %v1344_v52 = vrot.slane %v1337_v42, %v5877_v39  ;;  %4598 = vmatpush3.bf16.xpose.msra.mxu0 %v2167_v54  ;;  %v1649_v0 = vcombine.high %v5948_v38, %v5324_v32  ;;  %v1624_v2 = vcombine.high %v5921_v51, %v5324_v32 }
 0x3bf   : > { %4609 = vmatprep.subr.bf16.mxu0 %v5323_v6  ;;  %v2029_v1 = vsel %vm1978_vm1, %v1680_v53, 0  ;;  %v1599_v7 = vcombine.high %v5918_v50, %v5324_v32  ;;  %v1399_v8 = vshrl.u32 %v1319_v49, 16  ;;  %v1370_v13 = vcombine.high %v1369_v63, %v5324_v32 }
 0x3c0   : > { %v1398_v61 = vpack.i.b16 %v1344_v52, %v1319_v49  ;;  %v1394_v62 = vrot.slane %v1387_v47, %v5877_v39  ;;  %v1695_v4 = vpack.i.b16 %v1674_v59, %v1649_v0  ;;  %v1400_v5 = vshrl.u32 %v1344_v52, 16 }
 0x3c1   : > { %v1683_v9 = vpack.i.b16 %v1624_v2, %v1599_v7  ;;  %v1685_v50 = vshrl.u32 %v1624_v2, 16  ;;  %v1345_v14 = vcombine.high %v1344_v52, %v5324_v32  ;;  %v1684_v15 = vshrl.u32 %v1599_v7, 16 }
 0x3c2   : > { %4576 = vmatmul.mubr.msk.bf16.vlgmr.msra.gmra.mrb[4].mxu1 %vm1978_vm1, %v1398_v61  ;;  %v1410_v3 = vpack.i.b16 %v1394_v62, %v1369_v63  ;;  %v2259_v10 = vsel %vm1978_vm1, %v1695_v4, 0  ;;  %v1401_v51 = vpack.i.b16 %v1400_v5, %v1399_v8  ;;  %v1395_v11 = vcombine.high %v1394_v62, %v5324_v32 }
 0x3c3   : > { %4580 = vmatpush3.bf16.xpose.msra.mxu1 %v2029_v1  ;;  %4581 = vmatprep.mubr.msk.bf16.mxu1 %vm5325_vm0, %v5323_v6  ;;  %v2075_v12 = vsel %vm1978_vm1, %v1683_v9, 0  ;;  %v1320_v18 = vcombine.high %v1319_v49, %v5324_v32  ;;  %v1686_v19 = vpack.i.b16 %v1685_v50, %v1684_v15  ;;  %v1691_v22 = vshrl.u32 %v5951_v40, 16 }
 0x3c4   : > { %4585 = vmatprep.subr.bf16.mxu1 %v5323_v6  ;;  %v1416_v17 = vpack.i.b16 %v1395_v11, %v1370_v13  ;;  %v1406_v23 = vshrl.u32 %v1345_v14, 16  ;;  %v1690_v25 = vshrl.u32 %v5948_v38, 16  ;;  %v1697_v31 = vshrl.u32 %v1674_v59, 16 }
 0x3c5   : > { %4600 = vmatmul.mubr.msk.bf16.vlgmr.msra.gmra.mrb[4].mxu0 %vm1978_vm1, %v1410_v3  ;;  %v1404_v20 = vpack.i.b16 %v1345_v14, %v1320_v18  ;;  %v2121_v21 = vsel %vm1978_vm1, %v1686_v19, 0  ;;  %v1405_v26 = vshrl.u32 %v1320_v18, 16  ;;  %v1412_v33 = vshrl.u32 %v1394_v62, 16 }
 0x3c6   : > { %4610 = vmatpush3.bf16.xpose.msra.mxu0 %v2259_v10  ;;  %4611 = vmatprep.mubr.msk.bf16.mxu0 %vm5325_vm0, %v5323_v6  ;;  %v1692_v27 = vpack.i.b16 %v1691_v22, %v1690_v25  ;;  %v1696_v34 = vshrl.u32 %v1649_v0, 16  ;;  %v1411_v35 = vshrl.u32 %v1369_v63, 16  ;;  %v1418_v40 = vshrl.u32 %v1395_v11, 16 }
 0x3c7   : > { %4621 = vmatprep.subr.bf16.mxu0 %v5323_v6  ;;  %v1407_v28 = vpack.i.b16 %v1406_v23, %v1405_v26  ;;  %v1417_v41 = vshrl.u32 %v1370_v13, 16  ;;  %v826_v43 = vand.u32 127, %v823_v55  ;;  %v5331_v45 = vmov -1e+30  }
 0x3c8   : > { %v2213_v30 = vsel %vm1978_vm1, %v1692_v27, 0  ;;  %v1698_v36 = vpack.i.b16 %v1697_v31, %v1696_v34  ;;  %v1413_v37 = vpack.i.b16 %v1412_v33, %v1411_v35 }
 0x3c9   : > { %v1419_v42 = vpack.i.b16 %v1418_v40, %v1417_v41  ;;  %vm827_vm2 = vcmp.ge.s32.totalorder %v5847_v56, %v826_v43 }
 0x3ca   : > { %4582 = vmatmul.mubr.msk.bf16.vlgmr.msra.gmra.mrb[8].mxu1 %vm1978_vm1, %v1401_v51  ;;  %v2305_v38 = vsel %vm1978_vm1, %v1698_v36, 0  ;;  %v828_v46 = vsel %vm827_vm2, 0.0, %v5331_v45 }
 0x3cb   : > { %4586 = vmatpush3.bf16.xpose.msra.mxu1 %v2075_v12  ;;  %4587 = vmatprep.mubr.msk.bf16.mxu1 %vm5325_vm0, %v5323_v6 }
 0x3cc   : > { %4591 = vmatprep.subr.bf16.mxu1 %v5323_v6 }
 0x3cd   : > { %4612 = vmatmul.mubr.msk.bf16.vlgmr.msra.gmra.mrb[8].mxu0 %vm1978_vm1, %v1416_v17 }
 0x3ce   : > { %4623 = vmatprep.mubr.msk.bf16.mxu0 %vm5325_vm0, %v5323_v6 }
 0x3d2   : > { %4588 = vmatmul.mubr.msk.bf16.vlgmr.msra.gmra.mrb[12].mxu1 %vm1978_vm1, %v1404_v20 }
 0x3d3   : > { %4592 = vmatpush3.bf16.xpose.msra.mxu1 %v2121_v21  ;;  %4593 = vmatprep.mubr.msk.bf16.mxu1 %vm5325_vm0, %v5323_v6 }
 0x3d4   : > { %4603 = vmatprep.subr.bf16.mxu1 %v5323_v6 }
 0x3da   : > { %4594 = vmatmul.mubr.msk.bf16.vlgmr.msra.gmra.mrb[16].mxu1 %vm1978_vm1, %v1407_v28 }
 0x3db   : > { %4604 = vmatpush3.bf16.xpose.msra.mxu1 %v2213_v30  ;;  %4605 = vmatprep.mubr.msk.bf16.mxu1 %vm5325_vm0, %v5323_v6 }
 0x3dc   : > { %4615 = vmatprep.subr.bf16.mxu1 %v5323_v6 }
 0x3e2   : > { %4606 = vmatmul.mubr.msk.bf16.vlgmr.msra.gmra.mrb[20].mxu1 %vm1978_vm1, %v1413_v37 }
 0x3e3   : > { %4616 = vmatpush3.bf16.xpose.msra.mxu1 %v2305_v38  ;;  %4617 = vmatprep.mubr.msk.bf16.mxu1 %vm5325_vm0, %v5323_v6 }
 0x3e4   : > { %4627 = vmatprep.subr.bf16.mxu1 %v5323_v6 }
 0x3ea   : > { %4618 = vmatmul.mubr.msk.bf16.vlgmr.msra.gmra.mrb[24].mxu1 %vm1978_vm1, %v1419_v42 }
 0x3eb   : > { %4629 = vmatprep.mubr.msk.bf16.mxu1 %vm5325_vm0, %v5323_v6 }
 0x495   : > { %v2019_v44 = vpop.f32.mrb[4].mxu1 }
 0x496   : > { %v2347_v48 = vmul.f32 0.17677669, %v2019_v44  ;;  %v4577_v49 = vpop.f32.mrb[5].mxu1 }
 0x497   : > { %v2022_v47 = vpop.f32.mrb[6].mxu1 }
 0x498   : > { %v4578_v52 = vpop.f32.mrb[7].mxu1  ;;  %v2355_v53 = vadd.f32 %v2347_v48, %v828_v46  ;;  %v2203_v54 = vpop.f32.mrb[4].mxu0 }
 0x499   : > { %v4601_v61 = vpop.f32.mrb[5].mxu0  ;;  %v2351_v18 = vmul.f32 0.17677669, %v2203_v54 }
 0x49a   : > { %v2364_v59 = vsel %vm2363_vm3, %v2355_v53, -inf  ;;  %v2206_v62 = vpop.f32.mrb[6].mxu0 }
 0x49b   : > { %2365 = vmax.xlane.f32.xlu0 %v2364_v59  ;;  %v4602_v63 = vpop.f32.mrb[7].mxu0  ;;  %v2359_v27 = vadd.f32 %v2351_v18, %v828_v46 }
 0x49d   : > { %v2065_v0 = vpop.f32.mrb[8].mxu1  ;;  %v2376_v33 = vsel %vm2363_vm3, %v2359_v27, -inf }
 0x49e   : > { %v2348_v55 = vmul.f32 0.17677669, %v2065_v0  ;;  %v4583_v1 = vpop.f32.mrb[9].mxu1 }
 0x49f   : > { %v2068_v2 = vpop.f32.mrb[10].mxu1 }
 0x4a0   : > { %v4584_v3 = vpop.f32.mrb[11].mxu1  ;;  %v2356_v4 = vadd.f32 %v2348_v55, %v828_v46  ;;  %v2295_v5 = vpop.f32.mrb[8].mxu0 }
 0x4a1   : > { %v4613_v8 = vpop.f32.mrb[9].mxu0  ;;  %v2353_v25 = vmul.f32 0.17677669, %v2295_v5 }
 0x4a2   : > { %v2367_v7 = vsel %vm2363_vm3, %v2356_v4, -inf  ;;  %v2298_v9 = vpop.f32.mrb[10].mxu0 }
 0x4a3   : > { %2368 = vmax.xlane.f32.xlu1 %v2367_v7  ;;  %v4614_v10 = vpop.f32.mrb[11].mxu0  ;;  %v2361_v34 = vadd.f32 %v2353_v25, %v828_v46 }
 0x4a5   : > { %v2111_v51 = vpop.f32.mrb[12].mxu1  ;;  %v2382_v40 = vsel %vm2363_vm3, %v2361_v34, -inf }
 0x4a6   : > { %v2349_v11 = vmul.f32 0.17677669, %v2111_v51  ;;  %v4589_v12 = vpop.f32.mrb[13].mxu1 }
 0x4a7   : > { %v2114_v50 = vpop.f32.mrb[14].mxu1 }
 0x4a8   : > { %v4590_v13 = vpop.f32.mrb[15].mxu1  ;;  %v6019_v14 = vadd.f32 %v2349_v11, %v828_v46 }
 0x4aa   : > { %v2370_v15 = vsel %vm2363_vm3, %v6019_v14, -inf }
 0x4ab   : > { %2371 = vmax.xlane.f32.xlu0 %v2370_v15 }
 0x4ad   : > { %v2157_v17 = vpop.f32.mrb[16].mxu1 }
 0x4ae   : > { %v2350_v19 = vmul.f32 0.17677669, %v2157_v17  ;;  %v4595_v20 = vpop.f32.mrb[17].mxu1 }
 0x4af   : > { %v2160_v21 = vpop.f32.mrb[18].mxu1 }
 0x4b0   : > { %v4596_v22 = vpop.f32.mrb[19].mxu1  ;;  %v2358_v23 = vadd.f32 %v2350_v19, %v828_v46 }
 0x4b2   : > { %v2373_v26 = vsel %vm2363_vm3, %v2358_v23, -inf }
 0x4b3   : > { %2374 = vmax.xlane.f32.xlu0 %v2373_v26 }
 0x4b5   : > { %v2249_v28 = vpop.f32.mrb[20].mxu1 }
 0x4b6   : > { %v2352_v30 = vmul.f32 0.17677669, %v2249_v28  ;;  %v4607_v31 = vpop.f32.mrb[21].mxu1 }
 0x4b7   : > { %v2252_v35 = vpop.f32.mrb[22].mxu1  ;;  %2377 = vmax.xlane.f32.xlu0 %v2376_v33 }
 0x4b8   : > { %v4608_v36 = vpop.f32.mrb[23].mxu1  ;;  %v2360_v37 = vadd.f32 %v2352_v30, %v828_v46 }
 0x4ba   : > { %v2379_v38 = vsel %vm2363_vm3, %v2360_v37, -inf }
 0x4bb   : > { %2380 = vmax.xlane.f32.xlu1 %v2379_v38  ;;  %2383 = vmax.xlane.f32.xlu0 %v2382_v40  ;;  %v1710_v40 = vshrl.u32 %v5859_v16, 16 }
 0x4bd   : > { %v2341_v41 = vpop.f32.mrb[24].mxu1 }
 0x4be   : > { %v2354_v42 = vmul.f32 0.17677669, %v2341_v41  ;;  %v4619_v43 = vpop.f32.mrb[25].mxu1 }
 0x4bf   : > { %v2344_v44 = vpop.f32.mrb[26].mxu1 }
 0x4c0   : > { %v4620_v45 = vpop.f32.mrb[27].mxu1  ;;  %v2362_v48 = vadd.f32 %v2354_v42, %v828_v46 }
 0x4c2   : > { %v2385_v49 = vsel %vm2363_vm3, %v2362_v48, -inf }
 0x4c3   : > { %2386 = vmax.xlane.f32.xlu1 %v2385_v49 }
 0x4d4   : > { %1702 = vrot.lane.b32.xlu1 %v5859_v16, %s5326_s5 }
 0x528   : > { %v2366_v47 = vpop.xlane.xlu0 %2365 }
 0x529   : > { %v2388_v52 = vsub.f32 %v2355_v53, %v2366_v47 }
 0x52b   : > { %v2396_v54 = vmul.f32 1.442695, %v2388_v52 }
 0x52d   : > { %4948 = vpow2.f32 %v2396_v54 }
 0x530   : > { %v2369_v59 = vpop.xlane.xlu1 %2368 }
 0x531   : > { %v2389_v61 = vsub.f32 %v2356_v4, %v2369_v59 }
 0x533   : > { %v2398_v62 = vmul.f32 1.442695, %v2389_v61 }
 0x535   : > { %4950 = vpow2.f32 %v2398_v62 }
 0x537   : > { %v6030_v63 = vpop.eup %4948 }
 0x538   : > { %v2412_v0 = vsel %vm2363_vm3, %v6030_v63, 0.0  ;;  %v2372_v1 = vpop.xlane.xlu0 %2371 }
 0x539   : > { %2413 = vadd.xlane.f32.xlu0 %v2412_v0  ;;  %v2390_v8 = vsub.f32 %v6019_v14, %v2372_v1 }
 0x53b   : > { %v2400_v12 = vmul.f32 1.442695, %v2390_v8 }
 0x53f   : > { %v6034_v46 = vpop.eup %4950 }
 0x540   : > { %v2415_v55 = vsel %vm2363_vm3, %v6034_v46, 0.0  ;;  %v2375_v53 = vpop.xlane.xlu0 %2374 }
 0x541   : > { %2416 = vadd.xlane.f32.xlu1 %v2415_v55  ;;  %v2391_v2 = vsub.f32 %v2358_v23, %v2375_v53 }
 0x543   : > { %v2402_v4 = vmul.f32 1.442695, %v2391_v2 }
 0x544   : > { %v2378_v3 = vpop.xlane.xlu0 %2377 }
 0x545   : > { %v2392_v5 = vsub.f32 %v2359_v27, %v2378_v3  ;;  %4952 = vpow2.f32 %v2402_v4 }
 0x547   : > { %v2404_v9 = vmul.f32 1.442695, %v2392_v5 }
 0x548   : > { %v2381_v7 = vpop.xlane.xlu1 %2380  ;;  %v2384_v51 = vpop.xlane.xlu0 %2383 }
 0x549   : > { %v2393_v10 = vsub.f32 %v2360_v37, %v2381_v7  ;;  %v2394_v50 = vsub.f32 %v2361_v34, %v2384_v51  ;;  %4954 = vpow2.f32 %v2404_v9 }
 0x54a   : > { %4956 = vpow2.f32 %v2400_v12 }
 0x54b   : > { %v2406_v13 = vmul.f32 1.442695, %v2393_v10  ;;  %v2408_v17 = vmul.f32 1.442695, %v2394_v50 }
 0x54d   : > { %4958 = vpow2.f32 %v2406_v13 }
 0x54e   : > { %4960 = vpow2.f32 %v2408_v17 }
 0x54f   : > { %1700 = vrot.lane.b32.xlu0 %v5859_v16, %s5327_s11  ;;  %v6043_v19 = vpop.eup %4952 }
 0x550   : > { %v2387_v11 = vpop.xlane.xlu1 %2386  ;;  %v2421_v14 = vsel %vm2363_vm3, %v6043_v19, 0.0 }
 0x551   : > { %v2395_v15 = vsub.f32 %v2362_v48, %v2387_v11 }
 0x552   : > { %1704 = vrot.lane.b32.xlu1 %v5859_v16, %s5328_s20 }
 0x553   : > { %v2410_v18 = vmul.f32 1.442695, %v2395_v15  ;;  %v6047_v20 = vpop.eup %4954 }
 0x554   : > { %v6049_v21 = vpop.eup %4956  ;;  %v2424_v22 = vsel %vm2363_vm3, %v6047_v20, 0.0  ;;  %v1703_v34 = vpop.permute.xlu1 %1702 }
 0x555   : > { %4962 = vpow2.f32 %v2410_v18  ;;  %v2418_v26 = vsel %vm2363_vm3, %v6049_v21, 0.0  ;;  %v1718_v42 = vshrl.u32 %v1703_v34, 16 }
 0x557   : > { %v6053_v23 = vpop.eup %4958 }
 0x558   : > { %v6055_v25 = vpop.eup %4960  ;;  %v2427_v27 = vsel %vm2363_vm3, %v6053_v23, 0.0 }
 0x559   : > { %v2430_v31 = vsel %vm2363_vm3, %v6055_v25, 0.0 }
 0x55f   : > { %v6061_v28 = vpop.eup %4962 }
 0x560   : > { %v2433_v30 = vsel %vm2363_vm3, %v6061_v28, 0.0 }
 0x56e   : > { %2422 = vadd.xlane.f32.xlu0 %v2421_v14 }
 0x572   : > { %2425 = vadd.xlane.f32.xlu0 %v2424_v22 }
 0x576   : > { %2419 = vadd.xlane.f32.xlu1 %v2418_v26  ;;  %2428 = vadd.xlane.f32.xlu0 %v2427_v27 }
 0x57a   : > { %2434 = vadd.xlane.f32.xlu0 %v2433_v30  ;;  %2431 = vadd.xlane.f32.xlu1 %v2430_v31 }
 0x5c6   : > { %v2414_v33 = vpop.xlane.xlu0 %2413 }
 0x5c7   : > { %4964 = vrcp.f32 %v2414_v33 }
 0x5ca   : > { %v1701_v35 = vpop.permute.xlu0 %1700 }
 0x5cb   : > { %v1711_v37 = vshrl.u32 %v1701_v35, 16  ;;  %v1708_v38 = vpack.i.b16 %v1701_v35, %v5859_v16 }
 0x5cd   : > { %v1712_v45 = vpack.i.b16 %v1711_v37, %v1710_v40  ;;  %v1729_v48 = vrot.slane %v1708_v38, %v5872_v29 }
 0x5ce   : > { %v2417_v36 = vpop.xlane.xlu1 %2416 }
 0x5cf   : > { %v1795_v59 = vrot.slane %v1712_v45, %v5872_v29  ;;  %4966 = vrcp.f32 %v2417_v36  ;;  %v1788_v22 = vcombine.high %v1712_v45, %v5869_v24 }
 0x5d1   : > { %v4965_v12 = vpop.eup %4964 }
 0x5d2   : > { %v1705_v41 = vpop.permute.xlu1 %1704  ;;  %v2444_v14 = vmul.f32 %v4965_v12, %v6030_v63 }
 0x5d3   : > { %v1716_v43 = vpack.i.b16 %v1705_v41, %v1703_v34  ;;  %v1719_v44 = vshrl.u32 %v1705_v41, 16  ;;  %v1722_v34 = vcombine.high %v1708_v38, %v5869_v24 }
 0x5d5   : > { %v1720_v49 = vpack.i.b16 %v1719_v44, %v1718_v42  ;;  %v1744_v47 = vrot.slane %v1716_v43, %v5872_v29  ;;  %v1737_v26 = vcombine.high %v1716_v43, %v5869_v24  ;;  %v1802_v43 = vrot.slane %v1788_v22, %v5872_v29 }
 0x5d7   : > { %v1752_v52 = vcombine.low %v1729_v48, %v1744_v47  ;;  %v1753_v54 = vcombine.high %v1729_v48, %v1744_v47  ;;  %v1810_v61 = vrot.slane %v1720_v49, %v5872_v29  ;;  %v1803_v13 = vcombine.high %v1720_v49, %v5869_v24 }
 0x5d8   : > { %v1751_v44 = vrot.slane %v1737_v26, %v5872_v29  ;;  %v2452_v48 = vpack.c.bf16 %v2444_v14, %v2444_v14 }
 0x5d9   : > { %v1760_v62 = vrot.slane %v1752_v52, %v5877_v39  ;;  %v1767_v16 = vrot.slane %v1753_v54, %v5877_v39  ;;  %v1818_v0 = vcombine.low %v1795_v59, %v1810_v61  ;;  %v1819_v55 = vcombine.high %v1795_v59, %v1810_v61  ;;  %v4967_v17 = vpop.eup %4966 }
 0x5da   : > { %v2445_v35 = vmul.f32 %v4967_v17, %v6034_v46  ;;  %v1817_v36 = vrot.slane %v1803_v13, %v5872_v29  ;;  %v1736_v46 = vrot.slane %v1722_v34, %v5872_v29 }
 0x5db   : > { %v1854_v1 = vcombine.low %v1760_v62, %v1767_v16  ;;  %v4340_v53 = vcombine.high %v1760_v62, %v1767_v16  ;;  %v1826_v2 = vrot.slane %v1818_v0, %v5877_v39  ;;  %v1833_v3 = vrot.slane %v1819_v55, %v5877_v39 }
 0x5dc   : > { %v1834_v38 = vcombine.low %v1802_v43, %v1817_v36  ;;  %v1835_v49 = vcombine.high %v1802_v43, %v1817_v36  ;;  %v2453_v52 = vpack.c.bf16 %v2445_v35, %v2445_v35  ;;  %v1768_v54 = vcombine.low %v1736_v46, %v1751_v44 }
 0x5dd   : > { %v1861_v4 = vrot.slane %v1854_v1, %v5872_v29  ;;  %v1869_v5 = vrot.slane %v4340_v53, %v5872_v29  ;;  %v1879_v7 = vcombine.low %v1826_v2, %v1833_v3  ;;  %v4341_v8 = vcombine.high %v1826_v2, %v1833_v3 }
 0x5de   : > { %v1769_v59 = vcombine.high %v1736_v46, %v1751_v44  ;;  %v1842_v62 = vrot.slane %v1834_v38, %v5877_v39  ;;  %v1849_v16 = vrot.slane %v1835_v49, %v5877_v39  ;;  %v1776_v0 = vrot.slane %v1768_v54, %v5877_v39 }
 0x5df   : > { %v1870_v9 = vcombine.low %v1861_v4, %v1869_v5  ;;  %v1886_v10 = vrot.slane %v1879_v7, %v5872_v29  ;;  %v1894_v51 = vrot.slane %v4341_v8, %v5872_v29 }
 0x5e0   : > { %v1783_v55 = vrot.slane %v1769_v59, %v5877_v39  ;;  %v1929_v1 = vcombine.low %v1842_v62, %v1849_v16  ;;  %v4343_v53 = vcombine.high %v1842_v62, %v1849_v16  ;;  %v4857_v62 = vld [vmem:[%s5748_s15 + $0x8] sm:$0xff]   ;;  %v4859_v16 = vld [vmem:[%s5748_s15 + $0x18] sm:$0xff]  }
 0x5e1   : > { %v1877_v11 = vrot.slane %v1870_v9, %v5877_v39  ;;  %v1895_v50 = vcombine.low %v1886_v10, %v1894_v51 }
 0x5e2   : > { %v1904_v2 = vcombine.low %v1776_v0, %v1783_v55  ;;  %v4342_v3 = vcombine.high %v1776_v0, %v1783_v55  ;;  %v1936_v4 = vrot.slane %v1929_v1, %v5872_v29  ;;  %v1944_v5 = vrot.slane %v4343_v53, %v5872_v29  ;;  %v4860_v0 = vld [vmem:[%s5748_s15 + $0x20] sm:$0xff]   ;;  %v4861_v55 = vld [vmem:[%s5748_s15 + $0x28] sm:$0xff]  }
 0x5e3   : > { %v1878_v15 = vcombine.high %v1877_v11, %v5324_v32  ;;  %v1902_v18 = vrot.slane %v1895_v50, %v5877_v39  ;;  %v1957_v30 = vshrl.u32 %v1877_v11, 16 }
 0x5e4   : > { %v1911_v7 = vrot.slane %v1904_v2, %v5872_v29  ;;  %v1919_v8 = vrot.slane %v4342_v3, %v5872_v29  ;;  %v1945_v10 = vcombine.low %v1936_v4, %v1944_v5 }
 0x5e5   : > { %v1956_v27 = vpack.i.b16 %v1902_v18, %v1877_v11  ;;  %v1958_v31 = vshrl.u32 %v1902_v18, 16  ;;  %v1903_v33 = vcombine.high %v1902_v18, %v5324_v32  ;;  %v1963_v37 = vshrl.u32 %v1878_v15, 16 }
 0x5e6   : > { %v1920_v51 = vcombine.low %v1911_v7, %v1919_v8  ;;  %v1952_v12 = vrot.slane %v1945_v10, %v5877_v39 }
 0x5e7   : > { %v2465_v40 = vsel %vm2463_vm4, %v1956_v27, 0  ;;  %v1959_v63 = vpack.i.b16 %v1958_v31, %v1957_v30  ;;  %v1962_v41 = vpack.i.b16 %v1903_v33, %v1878_v15  ;;  %v1964_v42 = vshrl.u32 %v1903_v33, 16 }
 0x5e8   : > { %4622 = vmatpush3.bf16.msra.mxu0 %v2465_v40  ;;  %v1927_v50 = vrot.slane %v1920_v51, %v5877_v39  ;;  %v1970_v17 = vshrl.u32 %v1952_v12, 16  ;;  %v1953_v30 = vcombine.high %v1952_v12, %v5324_v32 }
 0x5e9   : > { %v2511_v45 = vsel %vm2463_vm4, %v1959_v63, 0  ;;  %4633 = vmatprep.subr.bf16.mxu0 %v5323_v6  ;;  %v1965_v24 = vpack.i.b16 %v1964_v42, %v1963_v37  ;;  %v2557_v47 = vsel %vm2463_vm4, %v1962_v41, 0 }
 0x5ea   : > { %4628 = vmatpush3.bf16.msra.mxu1 %v2511_v45  ;;  %v1969_v18 = vshrl.u32 %v1927_v50, 16  ;;  %v1928_v33 = vcombine.high %v1927_v50, %v5324_v32  ;;  %v1976_v35 = vshrl.u32 %v1953_v30, 16  ;;  %v1968_v41 = vpack.i.b16 %v1952_v12, %v1927_v50 }
 0x5eb   : > { %4624 = vmatmul.mubr.msk.bf16.vlgmr.msra.gmra.mrb[12].mxu0 %vm2363_vm3, %v2452_v48  ;;  %4639 = vmatprep.subr.bf16.mxu1 %v5323_v6  ;;  %v2603_v61 = vsel %vm2463_vm4, %v1965_v24, 0 }
 0x5ec   : > { %4634 = vmatpush3.bf16.msra.mxu0 %v2557_v47  ;;  %4635 = vmatprep.mubr.msk.bf16.mxu0 %vm5325_vm0, %v5323_v6  ;;  %v1971_v27 = vpack.i.b16 %v1970_v17, %v1969_v18  ;;  %v1975_v37 = vshrl.u32 %v1928_v33, 16  ;;  %v2649_v46 = vsel %vm2463_vm4, %v1968_v41, 0  ;;  %v1974_v49 = vpack.i.b16 %v1953_v30, %v1928_v33 }
 0x5ed   : > { %4630 = vmatmul.mubr.msk.bf16.vlgmr.msra.gmra.mrb[28].mxu1 %vm2363_vm3, %v2453_v52  ;;  %4645 = vmatprep.subr.bf16.mxu0 %v5323_v6 }
 0x5ee   : > { %4640 = vmatpush3.bf16.msra.mxu1 %v2603_v61  ;;  %4641 = vmatprep.mubr.msk.bf16.mxu1 %vm5325_vm0, %v5323_v6  ;;  %v2695_v34 = vsel %vm2463_vm4, %v1971_v27, 0  ;;  %v1977_v43 = vpack.i.b16 %v1976_v35, %v1975_v37  ;;  %v4856_v61 = vld [vmem:[%s5748_s15] sm:$0xff]  }
 0x5ef   : > { %4651 = vmatprep.subr.bf16.mxu1 %v5323_v6 }
 0x5f0   : > { %v2787_v38 = vsel %vm2463_vm4, %v1977_v43, 0 }
 0x5fb   : > { %v2423_v9 = vpop.xlane.xlu0 %2422 }
 0x5fc   : > { %4968 = vrcp.f32 %v2423_v9 }
 0x5ff   : > { %v2426_v11 = vpop.xlane.xlu0 %2425 }
 0x603   : > { %v2420_v13 = vpop.xlane.xlu1 %2419  ;;  %v2429_v15 = vpop.xlane.xlu0 %2428 }
 0x604   : > { %4970 = vrcp.f32 %v2420_v13 }
 0x605   : > { %4972 = vrcp.f32 %v2429_v15 }
 0x606   : > { %v4969_v14 = vpop.eup %4968  ;;  %4974 = vrcp.f32 %v2426_v11 }
 0x607   : > { %v2447_v22 = vmul.f32 %v4969_v14, %v6043_v19  ;;  %v2435_v26 = vpop.xlane.xlu0 %2434  ;;  %v2432_v36 = vpop.xlane.xlu1 %2431 }
 0x608   : > { %4976 = vrcp.f32 %v2435_v26 }
 0x609   : > { %v2455_v31 = vpack.c.bf16 %v2447_v22, %v2447_v22  ;;  %4978 = vrcp.f32 %v2432_v36 }
 0x60b   : > { %4642 = vmatmul.mubr.msk.bf16.vlgmr.msra.gmra.mrb[32].mxu1 %vm2363_vm3, %v2455_v31 }
 0x60c   : > { %4652 = vmatpush3.bf16.msra.mxu1 %v2695_v34  ;;  %4653 = vmatprep.mubr.msk.bf16.mxu1 %vm5325_vm0, %v5323_v6 }
 0x60d   : > { %4663 = vmatprep.subr.bf16.mxu1 %v5323_v6 }
 0x60e   : > { %v4971_v19 = vpop.eup %4970 }
 0x60f   : > { %v4973_v40 = vpop.eup %4972  ;;  %v2446_v63 = vmul.f32 %v4971_v19, %v6049_v21 }
 0x610   : > { %v2449_v42 = vmul.f32 %v4973_v40, %v6053_v23  ;;  %v4975_v45 = vpop.eup %4974 }
 0x611   : > { %v2454_v44 = vpack.c.bf16 %v2446_v63, %v2446_v63  ;;  %v2448_v21 = vmul.f32 %v4975_v45, %v6047_v20  ;;  %v2741_v20 = vsel %vm2463_vm4, %v1974_v49, 0 }
 0x612   : > { %v2457_v48 = vpack.c.bf16 %v2449_v42, %v2449_v42  ;;  %v4977_v24 = vpop.eup %4976 }
 0x613   : > { %4636 = vmatmul.mubr.msk.bf16.vlgmr.msra.gmra.mrb[16].mxu0 %vm2363_vm3, %v2454_v44  ;;  %v2451_v23 = vmul.f32 %v4977_v24, %v6061_v28  ;;  %v2456_v47 = vpack.c.bf16 %v2448_v21, %v2448_v21  ;;  %v4979_v52 = vpop.eup %4978 }
 0x614   : > { %4646 = vmatpush3.bf16.msra.mxu0 %v2649_v46  ;;  %4654 = vmatmul.mubr.msk.bf16.vlgmr.msra.gmra.mrb[36].mxu1 %vm2363_vm3, %v2457_v48  ;;  %v2450_v28 = vmul.f32 %v4979_v52, %v6055_v25  ;;  %v4858_v25 = vld [vmem:[%s5748_s15 + $0x10] sm:$0xff]  }
 0x615   : > { %4664 = vmatpush3.bf16.msra.mxu1 %v2787_v38  ;;  %4647 = vmatprep.mubr.msk.bf16.mxu0 %vm5325_vm0, %v5323_v6  ;;  %v2459_v54 = vpack.c.bf16 %v2451_v23, %v2451_v23 }
 0x616   : > { %4657 = vmatprep.subr.bf16.mxu0 %v5323_v6  ;;  %4665 = vmatprep.mubr.msk.bf16.mxu1 %vm5325_vm0, %v5323_v6  ;;  %v2458_v59 = vpack.c.bf16 %v2450_v28, %v2450_v28 }
 0x61b   : > { %4648 = vmatmul.mubr.msk.bf16.vlgmr.msra.gmra.mrb[20].mxu0 %vm2363_vm3, %v2456_v47 }
 0x61c   : > { %4658 = vmatpush3.bf16.msra.mxu0 %v2741_v20  ;;  %4666 = vmatmul.mubr.msk.bf16.vlgmr.msra.gmra.mrb[40].mxu1 %vm2363_vm3, %v2459_v54 }
 0x61d   : > { %4659 = vmatprep.mubr.msk.bf16.mxu0 %vm5325_vm0, %v5323_v6  ;;  %4669 = vmatprep.subr.bf16.mxu0 %v5323_v6 }
 0x61e   : > { %3535 = vmatprep.mubr.bf16.mxu1 %v5324_v32 }
 0x623   : > { %4660 = vmatmul.mubr.msk.bf16.vlgmr.msra.gmra.mrb[24].mxu0 %vm2363_vm3, %v2458_v59 }
 0x624   : > { %4685 = vmatprep.mubr.msk.bf16.mxu0 %vm5325_vm0, %v5323_v6  ;;  %4670 = vmatpush3.bf16.msra.mxu0 %v4856_v61 }
 0x625   : > { %4671 = vmatprep.subr.bf16.mxu0 %v5323_v6 }
 0x628   : > { %4672 = vmatpush3.bf16.msra.mxu0 %v4857_v62 }
 0x629   : > { %4673 = vmatprep.subr.bf16.mxu0 %v5323_v6 }
 0x62c   : > { %4674 = vmatpush3.bf16.msra.mxu0 %v4858_v25 }
 0x62d   : > { %4675 = vmatprep.subr.bf16.mxu0 %v5323_v6 }
 0x630   : > { %4676 = vmatpush3.bf16.msra.mxu0 %v4859_v16 }
 0x631   : > { %4677 = vmatprep.subr.bf16.mxu0 %v5323_v6 }
 0x634   : > { %4678 = vmatpush3.bf16.msra.mxu0 %v4860_v0 }
 0x635   : > { %4679 = vmatprep.subr.bf16.mxu0 %v5323_v6 }
 0x638   : > { %4680 = vmatpush3.bf16.msra.mxu0 %v4861_v55 }
 0x639   : > { %4681 = vmatprep.subr.bf16.mxu0 %v5323_v6 }
 0x6be   : > { %v2501_v1 = vpop.f32.mrb[12].mxu0 }
 0x6bf   : > { %v4625_v53 = vpop.f32.mrb[13].mxu0 }
 0x6c0   : > { %v2504_v2 = vpop.f32.mrb[14].mxu0  ;;  %v2547_v3 = vpop.f32.mrb[28].mxu1 }
 0x6c1   : > { %v4626_v4 = vpop.f32.mrb[15].mxu0  ;;  %v4631_v5 = vpop.f32.mrb[29].mxu1 }
 0x6c2   : > { %v2550_v7 = vpop.f32.mrb[30].mxu1 }
 0x6c3   : > { %v4632_v8 = vpop.f32.mrb[31].mxu1 }
 0x6de   : > { %v2639_v9 = vpop.f32.mrb[32].mxu1 }
 0x6df   : > { %v2845_v10 = vcombine.low %v2547_v3, %v2639_v9  ;;  %v2846_v51 = vcombine.high %v2547_v3, %v2639_v9  ;;  %v4643_v11 = vpop.f32.mrb[33].mxu1 }
 0x6e0   : > { %v2642_v12 = vpop.f32.mrb[34].mxu1 }
 0x6e1   : > { %v4644_v50 = vpop.f32.mrb[35].mxu1  ;;  %v2853_v27 = vrot.slane %v2845_v10, %v5872_v29  ;;  %v2860_v30 = vrot.slane %v2846_v51, %v5872_v29 }
 0x6e6   : > { %v2593_v13 = vpop.f32.mrb[16].mxu0 }
 0x6e7   : > { %v2829_v15 = vcombine.low %v2501_v1, %v2593_v13  ;;  %v2830_v17 = vcombine.high %v2501_v1, %v2593_v13  ;;  %v2731_v18 = vpop.f32.mrb[36].mxu1  ;;  %v4637_v14 = vpop.f32.mrb[17].mxu0 }
 0x6e8   : > { %v4655_v22 = vpop.f32.mrb[37].mxu1  ;;  %v2596_v26 = vpop.f32.mrb[18].mxu0 }
 0x6e9   : > { %v2837_v31 = vrot.slane %v2829_v15, %v5872_v29  ;;  %v2844_v33 = vrot.slane %v2830_v17, %v5872_v29  ;;  %v2734_v34 = vpop.f32.mrb[38].mxu1  ;;  %v4638_v35 = vpop.f32.mrb[19].mxu0 }
 0x6ea   : > { %v4656_v36 = vpop.f32.mrb[39].mxu1 }
 0x6eb   : > { %v2861_v19 = vcombine.low %v2837_v31, %v2853_v27  ;;  %v2862_v37 = vcombine.high %v2837_v31, %v2853_v27  ;;  %v2877_v40 = vcombine.low %v2844_v33, %v2860_v30  ;;  %v2878_v63 = vcombine.high %v2844_v33, %v2860_v30 }
 0x6ed   : > { %v2869_v41 = vrot.slane %v2861_v19, %v5877_v39  ;;  %v2876_v42 = vrot.slane %v2862_v37, %v5877_v39  ;;  %v2885_v43 = vrot.slane %v2877_v40, %v5877_v39  ;;  %v2892_v44 = vrot.slane %v2878_v63, %v5877_v39 }
 0x6ee   : > { %v2685_v45 = vpop.f32.mrb[20].mxu0 }
 0x6ef   : > { %v2965_v48 = vcombine.low %v2869_v41, %v2876_v42  ;;  %v4360_v24 = vcombine.high %v2869_v41, %v2876_v42  ;;  %v2981_v46 = vcombine.low %v2885_v43, %v2892_v44  ;;  %v4361_v38 = vcombine.high %v2885_v43, %v2892_v44  ;;  %v2823_v21 = vpop.f32.mrb[40].mxu1  ;;  %v4649_v23 = vpop.f32.mrb[21].mxu0  ;;  %v4862_v41 = vld [vmem:[%s5748_s15 + $0x30] sm:$0xff]  }
 0x6f0   : > { %v2913_v49 = vcombine.low %v2731_v18, %v2823_v21  ;;  %v2914_v47 = vcombine.high %v2731_v18, %v2823_v21  ;;  %v4667_v52 = vpop.f32.mrb[41].mxu1  ;;  %v2688_v54 = vpop.f32.mrb[22].mxu0  ;;  %4682 = vmatpush3.bf16.msra.mxu0 %v4862_v41 }
 0x6f1   : > { %v2972_v20 = vrot.slane %v2965_v48, %v5872_v29  ;;  %v2980_v28 = vrot.slane %v4360_v24, %v5872_v29  ;;  %v2988_v59 = vrot.slane %v2981_v46, %v5872_v29  ;;  %v2996_v61 = vrot.slane %v4361_v38, %v5872_v29  ;;  %v2826_v62 = vpop.f32.mrb[42].mxu1  ;;  %v4650_v25 = vpop.f32.mrb[23].mxu0  ;;  %4683 = vmatprep.subr.bf16.mxu0 %v5323_v6  ;;  %v4863_v52 = vld [vmem:[%s5748_s15 + $0x38] sm:$0xff]  }
 0x6f2   : > { %v4668_v16 = vpop.f32.mrb[43].mxu1  ;;  %v2921_v15 = vrot.slane %v2913_v49, %v5872_v29  ;;  %v2928_v17 = vrot.slane %v2914_v47, %v5872_v29 }
 0x6f3   : > { %v2998_v0 = vcombine.high %v2972_v20, %v2980_v28  ;;  %v3014_v55 = vcombine.high %v2988_v59, %v2996_v61  ;;  %v2997_v1 = vcombine.low %v2972_v20, %v2980_v28  ;;  %v3013_v53 = vcombine.low %v2988_v59, %v2996_v61 }
 0x6f4   : > { %4684 = vmatpush3.bf16.msra.mxu0 %v4863_v52  ;;  %v4888_v52 = vld [vmem:[%s5750_s28 + $0x80] ss:$16 sps:$4 sm:$0xff]  }
 0x6f5   : > { %v3012_v2 = vrot.slane %v2998_v0, %v5877_v39  ;;  %v3028_v3 = vrot.slane %v3014_v55, %v5877_v39  ;;  %v6178_v4 = vrot.slane %v2997_v1, %v5877_v39  ;;  %v3021_v5 = vrot.slane %v3013_v53, %v5877_v39 }
 0x6f6   : > { %v2777_v7 = vpop.f32.mrb[24].mxu0 }
 0x6f7   : > { %v2897_v8 = vcombine.low %v2685_v45, %v2777_v7  ;;  %v2898_v9 = vcombine.high %v2685_v45, %v2777_v7  ;;  %v4661_v10 = vpop.f32.mrb[25].mxu0  ;;  %v3031_v51 = vcombine.low %v3012_v2, %v3028_v3  ;;  %v3029_v11 = vcombine.low %v6178_v4, %v3021_v5 }
 0x6f8   : > { %v2780_v12 = vpop.f32.mrb[26].mxu0  ;;  %v3030_v50 = vcombine.high %v6178_v4, %v3021_v5  ;;  %v3032_v13 = vcombine.high %v3012_v2, %v3028_v3 }
 0x6f9   : > { %v2905_v18 = vrot.slane %v2897_v8, %v5872_v29  ;;  %v2912_v14 = vrot.slane %v2898_v9, %v5872_v29  ;;  %v4662_v22 = vpop.f32.mrb[27].mxu0 }
 0x6fb   : > { %v2929_v26 = vcombine.low %v2905_v18, %v2921_v15  ;;  %v2930_v27 = vcombine.high %v2905_v18, %v2921_v15  ;;  %v2945_v30 = vcombine.low %v2912_v14, %v2928_v17  ;;  %v2946_v31 = vcombine.high %v2912_v14, %v2928_v17  ;;  %v5000_v15 = vld [vmem:[#allocation2] sm:$0xff] }
 0x6fd   : > { %v2937_v33 = vrot.slane %v2929_v26, %v5877_v39  ;;  %v2944_v34 = vrot.slane %v2930_v27, %v5877_v39  ;;  %v2953_v35 = vrot.slane %v2945_v30, %v5877_v39  ;;  %v2960_v36 = vrot.slane %v2946_v31, %v5877_v39  ;;  %v4864_v26 = vld [vmem:[%s5750_s28] ss:$16 sps:$4 sm:$0xff]   ;;  %v4866_v27 = vld [vmem:[%s5750_s28 + $0x4] ss:$16 sps:$4 sm:$0xff]   ;;  %v4867_v30 = vld [vmem:[%s5750_s28 + $0x8] ss:$16 sps:$4 sm:$0xff]  }
 0x6fe   : > { %v4869_v31 = vld [vmem:[%s5750_s28 + $0xc] ss:$16 sps:$4 sm:$0xff]   ;;  %3503 = vmatprep.subr.bf16.mxu1 %v4866_v27  ;;  %v4915_v27 = vld [vmem:[%s5788_s17 + $0x80] sm:$0xff]  }
 0x6ff   : > { %v3033_v19 = vcombine.low %v2937_v33, %v2944_v34  ;;  %v4362_v37 = vcombine.high %v2937_v33, %v2944_v34  ;;  %v3049_v40 = vcombine.low %v2953_v35, %v2960_v36  ;;  %v4363_v63 = vcombine.high %v2953_v35, %v2960_v36  ;;  %v4872_v33 = vld [vmem:[%s5750_s28 + $0x24] ss:$16 sps:$4 sm:$0xff]   ;;  %v4875_v34 = vld [vmem:[%s5750_s28 + $0x2c] ss:$16 sps:$4 sm:$0xff]   ;;  %3546 = vmatprep.subr.bf16.mxu0 %v4869_v31  ;;  %v4870_v35 = vld [vmem:[%s5750_s28 + $0x20] ss:$16 sps:$4 sm:$0xff]  }
 0x700   : > { %3504 = vmatpush1.bf16.msra.mxu1 %v4864_v26  ;;  %v4873_v36 = vld [vmem:[%s5750_s28 + $0x28] ss:$16 sps:$4 sm:$0xff]   ;;  %v4914_v26 = vld [vmem:[%s5788_s17] sm:$0xff]  }
 0x701   : > { %v3040_v42 = vrot.slane %v3033_v19, %v5872_v29  ;;  %v3048_v43 = vrot.slane %v4362_v37, %v5872_v29  ;;  %v3056_v44 = vrot.slane %v3049_v40, %v5872_v29  ;;  %v3064_v45 = vrot.slane %v4363_v63, %v5872_v29  ;;  %3505 = vmatprep.subr.bf16.mxu1 %v4872_v33  ;;  %v4916_v31 = vld [vmem:[%s5788_s17 + $0x48] sm:$0xff]  }
 0x702   : > { %v4917_v33 = vld [vmem:[%s5788_s17 + $0xc8] sm:$0xff]  }
 0x703   : > { %v3066_v48 = vcombine.high %v3040_v42, %v3048_v43  ;;  %v3082_v24 = vcombine.high %v3056_v44, %v3064_v45  ;;  %v3065_v46 = vcombine.low %v3040_v42, %v3048_v43  ;;  %v3081_v38 = vcombine.low %v3056_v44, %v3064_v45  ;;  %v4878_v45 = vld [vmem:[%s5750_s28 + $0x44] ss:$16 sps:$4 sm:$0xff]  }
 0x704   : > { %3506 = vmatpush1.bf16.msra.mxu1 %v4870_v35  ;;  %v4919_v35 = vld [vmem:[%s5788_s17 + $0x88] sm:$0xff]  }
 0x705   : > { %v3080_v21 = vrot.slane %v3066_v48, %v5877_v39  ;;  %v3096_v23 = vrot.slane %v3082_v24, %v5877_v39  ;;  %v3073_v49 = vrot.slane %v3065_v46, %v5877_v39  ;;  %v3089_v47 = vrot.slane %v3081_v38, %v5877_v39  ;;  %v4881_v48 = vld [vmem:[%s5750_s28 + $0x4c] ss:$16 sps:$4 sm:$0xff]   ;;  %v4876_v24 = vld [vmem:[%s5750_s28 + $0x40] ss:$16 sps:$4 sm:$0xff]   ;;  %v4879_v46 = vld [vmem:[%s5750_s28 + $0x48] ss:$16 sps:$4 sm:$0xff]   ;;  %3507 = vmatprep.subr.bf16.mxu1 %v4878_v45 }
 0x706   : > { %v4884_v38 = vld [vmem:[%s5750_s28 + $0x64] ss:$16 sps:$4 sm:$0xff]  }
 0x707   : > { %v3099_v54 = vcombine.low %v3080_v21, %v3096_v23  ;;  %v3098_v20 = vcombine.high %v3073_v49, %v3089_v47  ;;  %v3097_v28 = vcombine.low %v3073_v49, %v3089_v47  ;;  %v3100_v29 = vcombine.high %v3080_v21, %v3096_v23  ;;  %v4887_v21 = vld [vmem:[%s5750_s28 + $0x6c] ss:$16 sps:$4 sm:$0xff]   ;;  %v4882_v23 = vld [vmem:[%s5750_s28 + $0x60] ss:$16 sps:$4 sm:$0xff]   ;;  %v4885_v49 = vld [vmem:[%s5750_s28 + $0x68] ss:$16 sps:$4 sm:$0xff]  }
 0x708   : > { %3508 = vmatpush1.bf16.msra.mxu1 %v4876_v24  ;;  %v4890_v47 = vld [vmem:[%s5750_s28 + $0x84] ss:$16 sps:$4 sm:$0xff]  }
 0x709   : > { %v4814_v59 = vpack.i.bf16 %v3099_v54, %v3031_v51  ;;  %v4809_v61 = vpack.i.bf16 %v3098_v20, %v3030_v50  ;;  %v4819_v62 = vpack.i.bf16 %v3100_v29, %v3032_v13  ;;  %v4364_v51 = vld [vmem:[%s6450_s16] ss:$0 sm:$0xff]  ;;  %3509 = vmatprep.subr.bf16.mxu1 %v4884_v38  ;;  %v4891_v54 = vld [vmem:[%s5750_s28 + $0x88] ss:$16 sps:$4 sm:$0xff]   ;;  %v4929_v45 = vld [vmem:[%s5788_s17 + $0xe0] sm:$0xff]  }
 0x70a   : > { %v4893_v20 = vld [vmem:[%s5750_s28 + $0x8c] ss:$16 sps:$4 sm:$0xff]   ;;  %v4931_v24 = vld [vmem:[%s5788_s17 + $0xa0] sm:$0xff]  }
 0x70b   : > { %4815 = vrot.lane.b32.xlu0 %v4814_v59, %s5326_s5  ;;  %4810 = vrot.lane.b32.xlu1 %v4809_v61, %s5328_s20  ;;  %v4899_v29 = vld [vmem:[%s5750_s28 + $0xac] ss:$16 sps:$4 sm:$0xff]   ;;  %v4894_v59 = vld [vmem:[%s5750_s28 + $0xa0] ss:$16 sps:$4 sm:$0xff]  }
 0x70c   : > { %3510 = vmatpush1.bf16.msra.mxu1 %v4882_v23  ;;  %v4897_v61 = vld [vmem:[%s5750_s28 + $0xa8] ss:$16 sps:$4 sm:$0xff]  }
 0x70d   : > { %3511 = vmatprep.subr.bf16.mxu1 %v4890_v47  ;;  %v4933_v38 = vld [vmem:[%s5788_s17 + $0xe8] sm:$0xff]   ;;  %v4937_v47 = vld [vmem:[%s5788_s17 + $0xf0] sm:$0xff]  }
 0x70e   : > { %v4935_v23 = vld [vmem:[%s5788_s17 + $0xa8] sm:$0xff]  }
 0x70f   : > { %4820 = vrot.lane.b32.xlu1 %v4819_v62, %s5327_s11  ;;  %v4902_v62 = vld [vmem:[%s5750_s28 + $0xc4] ss:$16 sps:$4 sm:$0xff]  }
 0x710   : > { %3512 = vmatpush1.bf16.msra.mxu1 %v4888_v52  ;;  %v4938_v52 = vld [vmem:[%s5788_s17 + $0x30] sm:$0xff]  }
 0x77d   : > { %v4816_v6 = vpop.permute.xlu0 %4815  ;;  %v4811_v25 = vpop.permute.xlu1 %4810 }
 0x77e   : > { %v4813_v16 = vunpack.i.h.bf16 %v4811_v25  ;;  %v4812_v0 = vunpack.i.l.bf16 %v4811_v25  ;;  %v4818_v39 = vunpack.i.h.bf16 %v4816_v6  ;;  %v4817_v55 = vunpack.i.l.bf16 %v4816_v6  ;;  %v4905_v6 = vld [vmem:[%s5750_s28 + $0xcc] ss:$16 sps:$4 sm:$0xff]   ;;  %v4900_v25 = vld [vmem:[%s5750_s28 + $0xc0] ss:$16 sps:$4 sm:$0xff]  }
 0x780   : > { %v3125_v1 = vsel %vm1978_vm1, %v3029_v11, %v4812_v0  ;;  %v3126_v53 = vsel %vm1978_vm1, %v3097_v28, %v4813_v16  ;;  %v4896_v28 = vld [vmem:[%s5750_s28 + $0xa4] ss:$16 sps:$4 sm:$0xff]   ;;  %v4903_v16 = vld [vmem:[%s5750_s28 + $0xc8] ss:$16 sps:$4 sm:$0xff]  }
 0x781   : > { %v4821_v2 = vpop.permute.xlu1 %4820  ;;  %v3128_v5 = vsel %vm3127_vm5, %v3125_v1, %v4817_v55  ;;  %v3129_v7 = vsel %vm3127_vm5, %v3126_v53, %v4818_v39  ;;  %3513 = vmatprep.subr.bf16.mxu1 %v4896_v28  ;;  %v4908_v0 = vld [vmem:[%s5750_s28 + $0xe4] ss:$16 sps:$4 sm:$0xff]   ;;  %v4911_v39 = vld [vmem:[%s5750_s28 + $0xec] ss:$16 sps:$4 sm:$0xff]   ;;  %v4906_v55 = vld [vmem:[%s5750_s28 + $0xe0] ss:$16 sps:$4 sm:$0xff]  }
 0x782   : > { %v4823_v3 = vunpack.i.h.bf16 %v4821_v2  ;;  %v4822_v4 = vunpack.i.l.bf16 %v4821_v2  ;;  %3514 = vmatpush1.bf16.msra.mxu1 %v4894_v59  ;;  %v4909_v1 = vld [vmem:[%s5750_s28 + $0xe8] ss:$16 sps:$4 sm:$0xff]   ;;  %v4912_v53 = vld [vmem:[%s5788_s17 + $0x40] sm:$0xff]  }
 0x783   : > { %3515 = vmatprep.subr.bf16.mxu1 %v4902_v62  ;;  %v4913_v2 = vld [vmem:[%s5788_s17 + $0xc0] sm:$0xff]   ;;  %v4941_v28 = vld [vmem:[%s5788_s17 + $0xf8] sm:$0xff]   ;;  %v3337_v62 = vsub.s32 3, %v5847_v56 }
 0x784   : > { %v3131_v8 = vsel %vm3130_vm6, %v3128_v5, %v4822_v4  ;;  %v3132_v9 = vsel %vm3130_vm6, %v3129_v7, %v4823_v3  ;;  %v4943_v59 = vld [vmem:[%s5788_s17 + $0xb8] sm:$0xff]  }
 0x785   : > { %v3133_v10 = vpack.c.bf16 %v3132_v9, %v3131_v8 }
 0x786   : > { %3516 = vmatpush1.bf16.msra.mxu1 %v4900_v25 }
 0x787   : > { %4686 = vmatmul.mubr.bf16.vlgmr.msra.gmra.mrb[28].mxu0 %v3133_v10  ;;  %3517 = vmatprep.subr.bf16.mxu1 %v4908_v0 }
 0x788   : > { %3578 = vmatprep.mubr.bf16.mxu0 %v5324_v32  ;;  %v5001_v32 = vld [vmem:[#allocation2 + $0x8] sm:$0xff]  ;;  %3547 = vmatpush1.bf16.msra.mxu0 %v4867_v30 }
 0x789   : > { %3548 = vmatprep.subr.bf16.mxu0 %v4875_v34  ;;  %v4918_v34 = vld [vmem:[%s5788_s17 + $0x8] sm:$0xff]  }
 0x78a   : > { %3518 = vmatpush1.bf16.msra.mxu1 %v4906_v55 }
 0x78b   : > { %4509 = vmatprep.subr.bf16.mxu1 %v4912_v53 }
 0x78c   : > { %3549 = vmatpush1.bf16.msra.mxu0 %v4873_v36  ;;  %v4920_v36 = vld [vmem:[%s5788_s17 + $0x50] sm:$0xff]  }
 0x78d   : > { %3550 = vmatprep.subr.bf16.mxu0 %v4881_v48  ;;  %v4930_v48 = vld [vmem:[%s5788_s17 + $0x20] sm:$0xff]  }
 0x790   : > { %3551 = vmatpush1.bf16.msra.mxu0 %v4879_v46  ;;  %v4932_v46 = vld [vmem:[%s5788_s17 + $0x68] sm:$0xff]  }
 0x791   : > { %3552 = vmatprep.subr.bf16.mxu0 %v4887_v21  ;;  %v4934_v21 = vld [vmem:[%s5788_s17 + $0x28] sm:$0xff]  }
 0x794   : > { %3553 = vmatpush1.bf16.msra.mxu0 %v4885_v49  ;;  %v4936_v49 = vld [vmem:[%s5788_s17 + $0x70] sm:$0xff]  }
 0x795   : > { %3554 = vmatprep.subr.bf16.mxu0 %v4893_v20  ;;  %v4940_v20 = vld [vmem:[%s5788_s17 + $0x78] sm:$0xff]  }
 0x798   : > { %3555 = vmatpush1.bf16.msra.mxu0 %v4891_v54  ;;  %v4939_v54 = vld [vmem:[%s5788_s17 + $0xb0] sm:$0xff]  }
 0x799   : > { %3556 = vmatprep.subr.bf16.mxu0 %v4899_v29  ;;  %v4942_v29 = vld [vmem:[%s5788_s17 + $0x38] sm:$0xff]  }
 0x79c   : > { %3557 = vmatpush1.bf16.msra.mxu0 %v4897_v61  ;;  %v3321_v61 = vld [vmem:[%s5782_s22] sm:$0xf] }
 0x79d   : > { %3558 = vmatprep.subr.bf16.mxu0 %v4905_v6  ;;  %v3326_v6 = vrot.slane %v3321_v61, %v907_v57  ;;  %v3334_v25 = vrot.slane %v3321_v61, %v915_v58  ;;  %v3338_v0 = vrot.slane %v3321_v61, %v3337_v62 }
 0x7a0   : > { %3559 = vmatpush1.bf16.msra.mxu0 %v4903_v16  ;;  %v3330_v16 = vrot.slane %v3321_v61, %v911_v60 }
 0x7a1   : > { %3560 = vmatprep.subr.bf16.mxu0 %v4911_v39 }
 0x7a4   : > { %3561 = vmatpush1.bf16.msra.mxu0 %v4909_v1 }
 0x7a5   : > { %4531 = vmatprep.subr.bf16.mxu0 %v4913_v2 }
 0x85a   : > { %v3239_v11 = vpop.f32.mrb[28].mxu0 }
 0x85b   : > { %v3240_v12 = vadd.f32 %v4364_v51, %v3239_v11  ;;  %v4687_v50 = vpop.f32.mrb[29].mxu0 }
 0x85c   : > { %v3242_v13 = vpop.f32.mrb[30].mxu0 }
 0x85d   : > { %v6213_v17 = vadd.f32 %v5000_v15, %v3240_v12  ;;  %v3243_v18 = vadd.f32 %v4364_v51, %v3242_v13  ;;  %v4688_v14 = vpop.f32.mrb[31].mxu0  ;;  %v4373_v51 = vld [vmem:[%s800_s9] ss:$0 sm:$0xff] }
 0x85e   : > { %v4374_v15 = vld [vmem:[%s803_s4] ss:$0 sm:$0xff] }
 0x85f   : > { %v6215_v22 = vadd.f32 %v5001_v32, %v3243_v18  ;;  %3250 = vadd.xlane.f32.xlu1 %v6213_v17 }
 0x861   : > { %3252 = vadd.xlane.f32.xlu0 %v6215_v22 }
 0x8ec   : > { %v3251_v19 = vpop.xlane.xlu1 %3250 }
 0x8ed   : > { %v3254_v37 = vmul.f32 0.0078125, %v3251_v19  ;;  %v4921_v19 = vld [vmem:[%s5788_s17 + $0xd0] sm:$0xff]  }
 0x8ee   : > { %v3253_v40 = vpop.xlane.xlu0 %3252 }
 0x8ef   : > { %v6228_v63 = vsub.f32 %v6213_v17, %v3254_v37  ;;  %v3255_v41 = vmul.f32 0.0078125, %v3253_v40  ;;  %v4922_v37 = vld [vmem:[%s5788_s17 + $0x10] sm:$0xff]  }
 0x8f0   : > { %v4923_v40 = vld [vmem:[%s5788_s17 + $0x90] sm:$0xff]  }
 0x8f1   : > { %v6231_v42 = vsub.f32 %v6215_v22, %v3255_v41  ;;  %v3258_v43 = vmul.f32 %v6228_v63, %v6228_v63  ;;  %v4925_v41 = vld [vmem:[%s5788_s17 + $0xd8] sm:$0xff]  }
 0x8f3   : > { %3260 = vadd.xlane.f32.xlu0 %v3258_v43  ;;  %v3259_v44 = vmul.f32 %v6231_v42, %v6231_v42  ;;  %v4927_v43 = vld [vmem:[%s5788_s17 + $0x98] sm:$0xff]  }
 0x8f5   : > { %3262 = vadd.xlane.f32.xlu1 %v3259_v44  ;;  %v4928_v44 = vld [vmem:[%s5788_s17 + $0x60] sm:$0xff]  }
 0x980   : > { %v3261_v3 = vpop.xlane.xlu0 %3260 }
 0x981   : > { %v3264_v4 = vmul.f32 0.0078125, %v3261_v3 }
 0x982   : > { %v3263_v5 = vpop.xlane.xlu1 %3262 }
 0x983   : > { %v3266_v7 = vadd.f32 1e-05, %v3264_v4  ;;  %v3265_v8 = vmul.f32 0.0078125, %v3263_v5 }
 0x985   : > { %4980 = vrsqrt.f32 %v3266_v7  ;;  %v3267_v9 = vadd.f32 1e-05, %v3265_v8 }
 0x987   : > { %4982 = vrsqrt.f32 %v3267_v9 }
 0x98f   : > { %v4981_v10 = vpop.eup %4980 }
 0x990   : > { %v3270_v11 = vmul.f32 %v4981_v10, %v6228_v63  ;;  %v4924_v63 = vld [vmem:[%s5788_s17 + $0x58] sm:$0xff]  }
 0x991   : > { %v4983_v12 = vpop.eup %4982 }
 0x992   : > { %v3271_v50 = vmul.f32 %v4983_v12, %v6231_v42  ;;  %v3278_v13 = vmul.f32 %v4373_v51, %v3270_v11  ;;  %v4926_v42 = vld [vmem:[%s5788_s17 + $0x18] sm:$0xff]  }
 0x994   : > { %v3279_v18 = vmul.f32 %v4373_v51, %v3271_v50  ;;  %v3286_v14 = vadd.f32 %v4374_v15, %v3278_v13 }
 0x996   : > { %v3287_v32 = vadd.f32 %v4374_v15, %v3279_v18 }
 0x998   : > { %v3288_v30 = vpack.c.bf16 %v3287_v32, %v3286_v14 }
 0x99a   : > { %3536 = vmatmul.mubr.bf16.vlgmr.msra.gmra.mrb[44].mxu1 %v3288_v30  ;;  %3579 = vmatmul.mubr.bf16.vlgmr.msra.gmra.mrb[32].mxu0 %v3288_v30 }
 0x99b   : > { %4510 = vmatpush3.bf16.msra.mxu1 %v4914_v26  ;;  %4532 = vmatpush3.bf16.msra.mxu0 %v4915_v27 }
 0x99c   : > { %4511 = vmatprep.subr.bf16.mxu1 %v4916_v31  ;;  %4533 = vmatprep.subr.bf16.mxu0 %v4917_v33 }
 0x99f   : > { %4512 = vmatpush3.bf16.msra.mxu1 %v4918_v34  ;;  %4534 = vmatpush3.bf16.msra.mxu0 %v4919_v35 }
 0x9a0   : > { %4513 = vmatprep.subr.bf16.mxu1 %v4920_v36  ;;  %4535 = vmatprep.subr.bf16.mxu0 %v4921_v19 }
 0x9a3   : > { %4514 = vmatpush3.bf16.msra.mxu1 %v4922_v37  ;;  %4536 = vmatpush3.bf16.msra.mxu0 %v4923_v40 }
 0x9a4   : > { %4515 = vmatprep.subr.bf16.mxu1 %v4924_v63  ;;  %4537 = vmatprep.subr.bf16.mxu0 %v4925_v41 }
 0x9a7   : > { %4516 = vmatpush3.bf16.msra.mxu1 %v4926_v42  ;;  %4538 = vmatpush3.bf16.msra.mxu0 %v4927_v43 }
 0x9a8   : > { %4517 = vmatprep.subr.bf16.mxu1 %v4928_v44  ;;  %4539 = vmatprep.subr.bf16.mxu0 %v4929_v45 }
 0x9ab   : > { %4518 = vmatpush3.bf16.msra.mxu1 %v4930_v48  ;;  %4540 = vmatpush3.bf16.msra.mxu0 %v4931_v24 }
 0x9ac   : > { %4519 = vmatprep.subr.bf16.mxu1 %v4932_v46  ;;  %4541 = vmatprep.subr.bf16.mxu0 %v4933_v38 }
 0x9af   : > { %4520 = vmatpush3.bf16.msra.mxu1 %v4934_v21  ;;  %4542 = vmatpush3.bf16.msra.mxu0 %v4935_v23 }
 0x9b0   : > { %4521 = vmatprep.subr.bf16.mxu1 %v4936_v49  ;;  %4543 = vmatprep.subr.bf16.mxu0 %v4937_v47 }
 0x9b3   : > { %4522 = vmatpush3.bf16.msra.mxu1 %v4938_v52  ;;  %4544 = vmatpush3.bf16.msra.mxu0 %v4939_v54 }
 0x9b4   : > { %4523 = vmatprep.subr.bf16.mxu1 %v4940_v20  ;;  %4545 = vmatprep.subr.bf16.mxu0 %v4941_v28 }
 0x9b7   : > { %4524 = vmatpush3.bf16.msra.mxu1 %v4942_v29  ;;  %4546 = vmatpush3.bf16.msra.mxu0 %v4943_v59 }
 0xa6d   : > { %v3537_v39 = vpop.f32.mrb[44].mxu1  ;;  %v3580_v55 = vpop.f32.mrb[32].mxu0 }
 0xa6e   : > { %v3538_v1 = vadd.f32 %v3537_v39, %v3326_v6  ;;  %v3581_v53 = vadd.f32 %v3580_v55, %v3334_v25  ;;  %v3539_v2 = vpop.f32.mrb[45].mxu1  ;;  %v3582_v3 = vpop.f32.mrb[33].mxu0  ;;  %v4407_v39 = vld [vmem:[%s810_s7] ss:$0 sm:$0xff] }
 0xa6f   : > { %v3540_v4 = vadd.f32 %v3539_v2, %v3330_v16  ;;  %v3583_v5 = vadd.f32 %v3582_v3, %v3338_v0  ;;  %v3541_v7 = vpop.f32.mrb[46].mxu1  ;;  %v3584_v8 = vpop.f32.mrb[34].mxu0 }
 0xa70   : > { %v3597_v9 = vmul.f32 0.70710677, %v3538_v1  ;;  %v3599_v10 = vmul.f32 0.70710677, %v3581_v53  ;;  %v3542_v58 = vadd.f32 %v3541_v7, %v3326_v6  ;;  %v3585_v11 = vadd.f32 %v3584_v8, %v3334_v25  ;;  %v3543_v56 = vpop.f32.mrb[47].mxu1  ;;  %v3586_v60 = vpop.f32.mrb[35].mxu0 }
 0xa71   : > { %v3598_v57 = vmul.f32 0.70710677, %v3540_v4  ;;  %v3600_v51 = vmul.f32 0.70710677, %v3583_v5  ;;  %v3544_v12 = vadd.f32 %v3543_v56, %v3330_v16  ;;  %v3587_v50 = vadd.f32 %v3586_v60, %v3338_v0 }
 0xa72   : > { %4984 = verf.f32 %v3597_v9  ;;  %v3601_v13 = vmul.f32 0.70710677, %v3542_v58  ;;  %v3603_v15 = vmul.f32 0.70710677, %v3585_v11  ;;  %v3589_v34 = vmul.f32 0.5, %v3538_v1 }
 0xa73   : > { %4986 = verf.f32 %v3599_v10  ;;  %v3602_v18 = vmul.f32 0.70710677, %v3544_v12  ;;  %v3604_v14 = vmul.f32 0.70710677, %v3587_v50  ;;  %v3591_v35 = vmul.f32 0.5, %v3581_v53 }
 0xa74   : > { %4988 = verf.f32 %v3598_v57  ;;  %v3590_v37 = vmul.f32 0.5, %v3540_v4  ;;  %v3593_v63 = vmul.f32 0.5, %v3542_v58  ;;  %v3592_v43 = vmul.f32 0.5, %v3583_v5 }
 0xa75   : > { %4990 = verf.f32 %v3600_v51  ;;  %v3595_v45 = vmul.f32 0.5, %v3585_v11  ;;  %v3594_v21 = vmul.f32 0.5, %v3544_v12  ;;  %v3596_v52 = vmul.f32 0.5, %v3587_v50 }
 0xa76   : > { %4992 = verf.f32 %v3601_v13 }
 0xa77   : > { %4994 = verf.f32 %v3603_v15 }
 0xa78   : > { %4996 = verf.f32 %v3602_v18 }
 0xa79   : > { %4998 = verf.f32 %v3604_v14 }
 0xa7c   : > { %v4985_v32 = vpop.eup %4984 }
 0xa7d   : > { %v4987_v26 = vpop.eup %4986  ;;  %v3613_v31 = vadd.f32 1.0, %v4985_v32 }
 0xa7e   : > { %v4989_v27 = vpop.eup %4988  ;;  %v3615_v36 = vadd.f32 1.0, %v4987_v26 }
 0xa7f   : > { %v4991_v30 = vpop.eup %4990  ;;  %v3614_v40 = vadd.f32 1.0, %v4989_v27  ;;  %v3621_v46 = vmul.f32 %v3613_v31, %v3589_v34 }
 0xa80   : > { %v4993_v33 = vpop.eup %4992  ;;  %v3616_v44 = vadd.f32 1.0, %v4991_v30  ;;  %v3623_v49 = vmul.f32 %v3615_v36, %v3591_v35  ;;  %v4441_v35 = vld [vmem:[%s6454_s27] ss:$0 sm:$0xff] (!%p4440_p8) }
 0xa81   : > { %v4995_v19 = vpop.eup %4994  ;;  %v3617_v41 = vadd.f32 1.0, %v4993_v33  ;;  %v3622_v20 = vmul.f32 %v3614_v40, %v3590_v37  ;;  %v4442_v40 = vld [vmem:[%s6455_s14] ss:$0 sm:$0xff] (!%p4440_p8) }
 0xa82   : > { %v4997_v42 = vpop.eup %4996  ;;  %v3619_v48 = vadd.f32 1.0, %v4995_v19  ;;  %v3624_v59 = vmul.f32 %v3616_v44, %v3592_v43 }
 0xa83   : > { %v4999_v24 = vpop.eup %4998  ;;  %v3625_v38 = vmul.f32 %v3617_v41, %v3593_v63  ;;  %v3618_v23 = vadd.f32 1.0, %v4997_v42 }
 0xa84   : > { %v3627_v47 = vmul.f32 %v3619_v48, %v3595_v45  ;;  %v3620_v54 = vadd.f32 1.0, %v4999_v24 }
 0xa85   : > { %v3629_v28 = vpack.c.bf16 %v3625_v38, %v3621_v46  ;;  %v3626_v29 = vmul.f32 %v3618_v23, %v3594_v21 }
 0xa86   : > { %v3631_v61 = vpack.c.bf16 %v3627_v47, %v3623_v49  ;;  %v3628_v62 = vmul.f32 %v3620_v54, %v3596_v52 }
 0xa87   : > { %v3630_v6 = vpack.c.bf16 %v3626_v29, %v3622_v20 }
 0xa88   : > { %v3632_v25 = vpack.c.bf16 %v3628_v62, %v3624_v59 }
 0xa89   : > { %3928 = vmatprep.mubr.bf16.mxu1 %v3630_v6 }
 0xa8a   : > { %3969 = vmatprep.mubr.bf16.mxu0 %v3632_v25  ;;  %3929 = vmatmul.mubr.bf16.vlgmr.msra.gmra.mrb[48].mxu1 %v3629_v28 }
 0xa8b   : > { %3970 = vmatmul.mubr.bf16.vlgmr.msra.gmra.mrb[36].mxu0 %v3631_v61 }
 0xb5d   : > { %v4525_v16 = vpop.f32.mrb[48].mxu1 }
 0xb5e   : > { %v4547_v0 = vpop.f32.mrb[36].mxu0  ;;  %v4526_v55 = vpop.f32.mrb[49].mxu1 }
 0xb5f   : > { %v4527_v1 = vadd.f32 %v4526_v55, %v4525_v16  ;;  %v4548_v53 = vpop.f32.mrb[37].mxu0  ;;  %v4528_v2 = vpop.f32.mrb[50].mxu1 }
 0xb60   : > { %v4549_v3 = vadd.f32 %v4548_v53, %v4547_v0  ;;  %v4550_v4 = vpop.f32.mrb[38].mxu0  ;;  %v4529_v5 = vpop.f32.mrb[51].mxu1 }
 0xb61   : > { %v3931_v7 = vadd.f32 %v4527_v1, %v4407_v39  ;;  %v4530_v8 = vadd.f32 %v4529_v5, %v4528_v2  ;;  %v4551_v9 = vpop.f32.mrb[39].mxu0 }
 0xb62   : > { %v4552_v10 = vadd.f32 %v4551_v9, %v4550_v4 }
 0xb63   : > { %v3972_v57 = vadd.f32 %v4549_v3, %v3931_v7  ;;  %v3934_v51 = vadd.f32 %v4530_v8, %v4407_v39  ;;  %3985 = sbr.rel (%p4440_p8) target bundleno = 3237 (0xca5), region = 116 }
 0xb65   : > { %v3978_v58 = vadd.f32 %v3972_v57, %v6213_v17  ;;  %v3975_v11 = vadd.f32 %v4552_v10, %v3934_v51 }
 0xb67   : > { %3980 = vst [vmem:[#allocation2] sm:$0xff] %v3978_v58  ;;  %v3979_v56 = vadd.f32 %v3975_v11, %v6215_v22  ;;  %3988 = vadd.xlane.f32.xlu0 (!%p4440_p8), %v3978_v58 }
 0xb69   : > { %3981 = vst [vmem:[#allocation2 + $0x8] sm:$0xff] %v3979_v56 }
 0xb6b   : > { %3990 = vadd.xlane.f32.xlu0 %v3979_v56 }
 0xbf4   : > { %v3989_v60 = vpop.xlane.xlu0 %3988 }
 0xbf5   : > { %v3992_v12 = vmul.f32 0.0078125, %v3989_v60 }
 0xbf7   : > { %v3994_v50 = vsub.f32 %v3978_v58, %v3992_v12 }
 0xbf8   : > { %v3991_v13 = vpop.xlane.xlu0 %3990 }
 0xbf9   : > { %v3993_v15 = vmul.f32 0.0078125, %v3991_v13  ;;  %v3996_v18 = vmul.f32 %v3994_v50, %v3994_v50 }
 0xbfb   : > { %v3995_v14 = vsub.f32 %v3979_v56, %v3993_v15  ;;  %3998 = vadd.xlane.f32.xlu1 %v3996_v18 }
 0xbfd   : > { %v3997_v32 = vmul.f32 %v3995_v14, %v3995_v14 }
 0xbff   : > { %4000 = vadd.xlane.f32.xlu1 %v3997_v32 }
 0xc88   : > { %v3999_v17 = vpop.xlane.xlu1 %3998 }
 0xc89   : > { %v4002_v26 = vmul.f32 0.0078125, %v3999_v17 }
 0xc8b   : > { %v4004_v27 = vadd.f32 1e-05, %v4002_v26 }
 0xc8c   : > { %v4001_v22 = vpop.xlane.xlu1 %4000 }
 0xc8d   : > { %5002 = vrsqrt.f32 %v4004_v27  ;;  %v4003_v30 = vmul.f32 0.0078125, %v4001_v22 }
 0xc8f   : > { %v4005_v31 = vadd.f32 1e-05, %v4003_v30 }
 0xc91   : > { %5004 = vrsqrt.f32 %v4005_v31 }
 0xc97   : > { %v5003_v33 = vpop.eup %5002 }
 0xc98   : > { %v4008_v34 = vmul.f32 %v5003_v33, %v3994_v50 }
 0xc9a   : > { %v4016_v19 = vmul.f32 %v4441_v35, %v4008_v34 }
 0xc9b   : > { %v5005_v36 = vpop.eup %5004 }
 0xc9c   : > { %v4009_v37 = vmul.f32 %v5005_v36, %v3995_v14  ;;  %v4024_v41 = vadd.f32 %v4442_v40, %v4016_v19 }
 0xc9e   : > { %v4017_v63 = vmul.f32 %v4441_v35, %v4009_v37 }
 0xca0   : > { %v4025_v42 = vadd.f32 %v4442_v40, %v4017_v63 }
 0xca2   : > { %v4457_v43 = vpack.c.bf16 %v4025_v42, %v4024_v41 }
 0xca4   : > { %4458 = vst [vmem:[#allocation15] sm:$0xff] %v4457_v43  }
 0xca5 PF: > { %p4739_p9 = scmp.eq.s32.totalorder %s5593_s26, 1  ;;  %s5332_s30 = smov [#allocation15]  }
 0xca6   : > { %s4045_s1 = sshll.u32 %s5332_s30, 4  ;;  %s4046_s1 = int_to_ptr.vmem [resolvable:$true] %s4045_s1 }
 0xca7   : > { %s5214_s25 = scalar_lea.vmem %s4046_s1, 128  ;;  %p5221_p2 = scmp.lt.s32.totalorder %s4046_s1, %s4046_s1 }
 0xca8   : > { %p5215_p7 = scmp.ne.s32.totalorder %s4046_s1, %s5214_s25  ;;  %p5222_p12 = scmp.lt.s32.totalorder %s5214_s25, %s5214_s25 }
 0xcaa   : > { %p5216_p4 = pnand %p5215_p7, %p4739_p9  ;;  %p5223_p1 = por %p5222_p12, %p5221_p2 }
 0xcac   : > { %p5217_p13 = pneg %p5216_p4 }
 0xcae   : > { %p5224_p3 = pnand %p5223_p1, %p5217_p13 }
 0xcb0   : > { %5227 = shalt.err (!%p5224_p3)
}
 0xcb1   : > { %s6456_s0 = sld [smem:[#allocation40_spill]] }
 0xcb7   : > { %s5228_s2 = scalar_lea.hbm %s6456_s0, 128 }
 0xcb8   : > { %p5229_p11 = scmp.ne.s32.totalorder %s6456_s0, %s5228_s2  ;;  %p5234_p10 = scmp.lt.u32.totalorder %s5228_s2, %s6456_s0 }
 0xcba   : > { %p5230_p0 = pnand %p5229_p11, %p4739_p9 }
 0xcbc   : > { %p5231_p5 = pneg %p5230_p0 }
 0xcbe   : > { %p5236_p6 = pnand %p5234_p10, %p5231_p5 }
 0xcc0   : > { %5239 = shalt.err (!%p5236_p6)
}
 0xcc1   : > { %s5333_s16 = smov 4  }
 0xcc2   : > { %4710 = dma.vmem_to_hbm [thread:$0]  (%p4739_p9), %s4046_s1, 128, %s6456_s0, [#allocation5], %s5326_s5, %s5326_s5, %s5333_s16  }
 0xcc3   : > { %5281 = dma.done.wait (%p4739_p9), [#allocation5], 128  }
 0xcc4   : > { %5283 = vsyncadd (%p4739_p9), [#allocation5], 4294967168 }
 0xcc5 PF: > { %s6457_s28 = sld [smem:[#allocation23_spill]]  ;;  %s6458_s3 = sld [smem:[#allocation21_spill]] }
 0xcc6   : > { %s6459_s20 = sld [smem:[#allocation25_spill]]  ;;  %s6460_s21 = sld [smem:[#allocation22_spill]] }
 0xcc7   : > { %s6461_s22 = sld [smem:[#allocation24_spill]]  ;;  %s6462_s18 = smov %s5290_s19 }
 0xccb   : > { %s36_s23 = sadd.s32 1, %s6457_s28   ;;  %s6463_s19 = smov %s6458_s3 }
 0xccc   : > { %p33_p8 = scmp.ge.s32.totalorder %s36_s23, 4  }
 0xcce   :  { %35 = sbr.rel (!%p33_p8) target bundleno = 26 (0x1a), region = 209 }
 0xcd5   :  { %4061 = vsyncpa [#allocation4], 1 }
 0xcd6   :  { %4063 = vsyncpa [#allocation4 + $0x1], 1 }
 0xcd7   :  { %4064 = vsyncpa [#allocation7], 1 }
 0xcd8   :  { %4066 = vsyncpa [#allocation7 + $0x1], 1 }
 0xcd9   :  { %4067 = vsyncpa [#allocation10], 1 }
 0xcda   :  { %4069 = vsyncpa [#allocation10 + $0x1], 1 }
 0xcdb   :  { %4070 = vsyncpa [#allocation13], 1 }
 0xcdc   :  { %4072 = vsyncpa [#allocation13 + $0x1], 1 }
 0xcdd   :  { %4073 = vsyncpa [#allocation5], 1 }
 0xcde   :  { %4075 = vsyncpa [#allocation5 + $0x1], 1 }

</bundles_post_ra>
